<compile_context>
chip_gen: v7x
topology: tpu7x:2x2x1
jax: 0.10.0
libtpu: 0.0.40
codegen_flags: <defaults>
</compile_context>

<pallas_src>
import math
from functools import partial

import numpy as np
import jax
import jax.numpy as jnp
from jax.experimental import pallas as pl
from jax.experimental.pallas import tpu as pltpu


def _round_up(x, m):
    return ((x + m - 1) // m) * m


# ---------------------------------------------------------------------------
# Fused Pallas kernel (one grid step per document; both MHA blocks + all heads)
# ---------------------------------------------------------------------------
def _fused_local_rep_kernel(ent_ref, key_ref, val_ref, keep_ref,
                            sel_i_ref, sel_j_ref,
                            wqkv_ref, bqkv_ref, wo_ref, bo_ref,
                            outh_ref, outt_ref, *, num_heads):
    D2 = wqkv_ref.shape[-1]          # 2*D  ([h | t] concatenated on the output dim)
    D = D2 // 2
    dk = D // num_heads
    P = sel_i_ref.shape[0]           # padded pair count (multiple of 8)
    Dpad = wo_ref.shape[-1]          # output width, padded to a multiple of 128
    scale = 1.0 / math.sqrt(dk)

    ent = ent_ref[0]                 # (E, D)  bf16 entity reps (global_nodes)
    key = key_ref[0]                 # (M, D)  bf16 mention-sentence reps (attention keys)
    val = val_ref[0]                 # (M, D)  bf16 mention reps            (attention values)
    keep = keep_ref[0]               # (E, M)  bf16 0/1: 1 => mention belongs to entity
    sel_i = sel_i_ref[...]           # (P, E)  bf16 one-hot: pair p=i*E+j -> row i
    sel_j = sel_j_ref[...]           # (P, E)  bf16 one-hot: pair p=i*E+j -> row j

    # Q/K/V projections for BOTH attention blocks at once (bf16 operands, f32 accum).
    # 1/sqrt(dk) folded into the query incl. its bias == scaling the scores (documented).
    q2 = (jnp.dot(ent, wqkv_ref[0], preferred_element_type=jnp.float32)
          + bqkv_ref[0]) * scale                                               # (E, 2D) f32
    k2 = jnp.dot(key, wqkv_ref[1], preferred_element_type=jnp.float32) + bqkv_ref[1]
    v2 = jnp.dot(val, wqkv_ref[2], preferred_element_type=jnp.float32) + bqkv_ref[2]

    # Per-pair keep masks, hoisted out of the head loop (exact 0/1 via one-hot matmul).
    keep_h = jnp.dot(sel_i, keep, preferred_element_type=jnp.float32)          # (P, M)
    keep_t = jnp.dot(sel_j, keep, preferred_element_type=jnp.float32)          # (P, M)

    def attend_block(q_off, sel_q, keep_p, wo_b, bo_b):
        # wo_b: (D, Dpad) bf16 transposed/lane-padded output proj; bo_b: (1, Dpad) f32.
        acc = jnp.broadcast_to(bo_b, (P, Dpad))
        for n in range(num_heads):                      # unrolled (num_heads is small)
            lo = q_off + n * dk
            qh = q2[:, lo:lo + dk].astype(jnp.bfloat16)          # (E, dk)
            kh = k2[:, lo:lo + dk].astype(jnp.bfloat16)          # (M, dk)
            vh = v2[:, lo:lo + dk].astype(jnp.bfloat16)          # (M, dk)
            # compact (E, M) scores; exp BEFORE the pair expansion (E*M transcendentals)
            s = jax.lax.dot_general(qh, kh, (((1,), (1,)), ((), ())),
                                    preferred_element_type=jnp.float32)        # (E, M)
            es = jnp.exp(s - jnp.max(s, axis=-1, keepdims=True)).astype(jnp.bfloat16)
            # expand numerators to pairs with a one-hot matmul, mask with exact zeros
            es_p = jnp.dot(sel_q, es, preferred_element_type=jnp.float32)      # (P, M)
            p_un = es_p * keep_p                                                # (P, M)
            denom = jnp.sum(p_un, axis=-1, keepdims=True)                       # (P, 1)
            # normalize AFTER the PV matmul; guard fully-masked (padded-entity) rows
            inv = pl.reciprocal(jnp.maximum(denom, 1e-30), approx=True)
            ctx = jnp.dot(p_un.astype(jnp.bfloat16), vh,
                          preferred_element_type=jnp.float32) * inv             # (P, dk)
            # fold Wo per head straight into the lane-dense output accumulator
            acc = acc + jnp.dot(ctx.astype(jnp.bfloat16),
                                wo_b[n * dk:(n + 1) * dk, :],
                                preferred_element_type=jnp.float32)
        return acc

    # (h) block: query = tail entity j (query_2), mask = head entity i's mentions.
    # (t) block: query = head entity i (query_1), mask = tail entity j's mentions.
    outh_ref[0] = attend_block(0, sel_j, keep_h, wo_ref[0], bo_ref[0])
    outt_ref[0] = attend_block(D, sel_i, keep_t, wo_ref[1], bo_ref[1])


def fused_local_rep(entities, key, value, keep, sel_i, sel_j,
                    wqkv, bqkv, wo, bo, *, num_heads):
    """entities (B,E,D) bf16; key/value (B,M,D) bf16; keep (B,E,M) bf16 ->
       two (B, Ppad, Dpad) f32 outputs (rep_h, rep_t)."""
    B, E, D = entities.shape
    M = key.shape[1]
    P = sel_i.shape[0]
    Dpad = wo.shape[-1]
    D2 = 2 * D
    kernel = partial(_fused_local_rep_kernel, num_heads=num_heads)
    out_sd = jax.ShapeDtypeStruct((B, P, Dpad), jnp.float32)
    return pl.pallas_call(
        kernel,
        out_shape=(out_sd, out_sd),
        grid=(B,),                                        # B even -> both v7x TCs busy
        in_specs=[
            pl.BlockSpec((1, E, D), lambda b: (b, 0, 0)),      # entities
            pl.BlockSpec((1, M, D), lambda b: (b, 0, 0)),      # keys   (mention_sen_rep)
            pl.BlockSpec((1, M, D), lambda b: (b, 0, 0)),      # values (mentions)
            pl.BlockSpec((1, E, M), lambda b: (b, 0, 0)),      # keep mask
            pl.BlockSpec((P, E), lambda b: (0, 0)),            # sel_i (resident)
            pl.BlockSpec((P, E), lambda b: (0, 0)),            # sel_j (resident)
            pl.BlockSpec((3, D, D2), lambda b: (0, 0, 0)),     # Wq|Wk|Wv  ([h|t])
            pl.BlockSpec((3, 1, D2), lambda b: (0, 0, 0)),     # bq|bk|bv  ([h|t])
            pl.BlockSpec((2, D, Dpad), lambda b: (0, 0, 0)),   # Wo_h^T / Wo_t^T (padded)
            pl.BlockSpec((2, 1, Dpad), lambda b: (0, 0, 0)),   # bo_h  / bo_t    (padded)
        ],
        out_specs=(pl.BlockSpec((1, P, Dpad), lambda b: (b, 0, 0)),
                   pl.BlockSpec((1, P, Dpad), lambda b: (b, 0, 0))),
        compiler_params=pltpu.CompilerParams(
            dimension_semantics=("parallel",),
            vmem_limit_bytes=32 * 1024 * 1024),
    )(entities, key, value, keep, sel_i, sel_j, wqkv, bqkv, wo, bo)


# ---------------------------------------------------------------------------
# Parameter packing (done once; transposes / bf16 casts / padding hoisted)
# ---------------------------------------------------------------------------
def init_mha_params(key, D):
    ks = jax.random.split(key, 8)
    w = lambda k: jax.random.normal(k, (D, D), jnp.float32) * 0.05   # torch-style (Dout, Din)
    b = lambda k: jax.random.normal(k, (D,), jnp.float32) * 0.05
    return {"wq": w(ks[0]), "bq": b(ks[1]),
            "wk": w(ks[2]), "bk": b(ks[3]),
            "wv": w(ks[4]), "bv": b(ks[5]),
            "wo": w(ks[6]), "bo": b(ks[7])}


def pack_params(params):
    ph, pt = params["mha_h"], params["mha_t"]
    D = ph["wq"].shape[0]
    Dpad = _round_up(D, 128)
    cat = lambda a, b: jnp.concatenate([a.T, b.T], axis=1)           # (D, 2D)
    wqkv = jnp.stack([cat(ph["wq"], pt["wq"]),
                      cat(ph["wk"], pt["wk"]),
                      cat(ph["wv"], pt["wv"])], axis=0).astype(jnp.bfloat16)   # (3, D, 2D)
    bqkv = jnp.stack([
        jnp.concatenate([ph["bq"], pt["bq"]])[None, :],
        jnp.concatenate([ph["bk"], pt["bk"]])[None, :],
        jnp.concatenate([ph["bv"], pt["bv"]])[None, :],
    ], axis=0).astype(jnp.float32)                                             # (3, 1, 2D)
    pad_w = lambda w: jnp.zeros((D, Dpad), jnp.float32).at[:, :D].set(w.T)
    pad_b = lambda b: jnp.zeros((1, Dpad), jnp.float32).at[0, :D].set(b)
    wo = jnp.stack([pad_w(ph["wo"]), pad_w(pt["wo"])], 0).astype(jnp.bfloat16)  # (2, D, Dpad)
    bo = jnp.stack([pad_b(ph["bo"]), pad_b(pt["bo"])], 0)                       # (2, 1, Dpad)
    return wqkv, bqkv, wo, bo


# ---------------------------------------------------------------------------
# Host side: tiny int32/one-hot arrays only (all float work stays on device)
# ---------------------------------------------------------------------------
def build_indices(info_np, section_np):
    info_np = np.asarray(info_np)
    section_np = np.asarray(section_np)
    B = section_np.shape[0]
    E = int(section_np[:, 0].max())
    M_real = int(section_np[:, 1].max())
    Mp = _round_up(max(M_real, 1), 128)          # lane-dense mention axis
    P = E * E
    Pp = _round_up(P, 8)                         # sublane-dense pair axis

    men_off = np.zeros(B, dtype=np.int64)
    men_off[1:] = np.cumsum(section_np[:-1, 1])
    ent_off = np.zeros(B, dtype=np.int64)
    ent_off[1:] = np.cumsum(section_np[:-1, 0])

    men_gather = np.zeros((B, Mp), dtype=np.int32)
    sen_gather = np.zeros((B, Mp), dtype=np.int32)
    valid = np.zeros((B, Mp), dtype=np.float32)
    m_ids = np.full((B, Mp), -1, dtype=np.int32)   # split_n_pad(info, pad=-1)[:, :, 0]
    e_ids = np.full((B, E), -2, dtype=np.int32)    # split_n_pad(eid_ranges, pad=-2)
    for b in range(B):
        nm = int(section_np[b, 1]); ne = int(section_np[b, 0])
        rows = men_off[b] + np.arange(nm)
        men_gather[b, :nm] = rows
        sen_gather[b, :nm] = info_np[rows, 4]
        valid[b, :nm] = 1.0
        m_ids[b, :nm] = info_np[rows, 0]
        e_ids[b, :ne] = ent_off[b] + np.arange(ne)

    # one-hot pair selectors: pair p = i*E + j (zero rows for the sublane padding)
    sel_i = np.zeros((Pp, E), dtype=np.float32)
    sel_j = np.zeros((Pp, E), dtype=np.float32)
    ii, jj = np.meshgrid(np.arange(E), np.arange(E), indexing="ij")
    sel_i[np.arange(P), ii.reshape(-1)] = 1.0
    sel_j[np.arange(P), jj.reshape(-1)] = 1.0
    return dict(men_gather=men_gather, sen_gather=sen_gather, valid=valid,
                m_ids=m_ids, e_ids=e_ids, sel_i=sel_i, sel_j=sel_j)


@partial(jax.jit, static_argnames=("num_heads",))
def device_forward(entities, mentions_flat, sentences,
                   men_gather, sen_gather, valid, m_ids, e_ids,
                   sel_i, sel_j, wqkv, bqkv, wo, bo, *, num_heads):
    # split_n_pad + F.embedding as device-side gathers (padded rows zeroed)
    men = jnp.take(mentions_flat, men_gather, axis=0) * valid[:, :, None]    # (B, M, D)
    sen = jnp.take(sentences, sen_gather, axis=0) * valid[:, :, None]        # (B, M, D)
    keep = (m_ids[:, None, :] == e_ids[:, :, None]).astype(jnp.bfloat16)     # (B, E, M)
    out_h, out_t = fused_local_rep(
        entities.astype(jnp.bfloat16), sen.astype(jnp.bfloat16), men.astype(jnp.bfloat16),
        keep, sel_i.astype(jnp.bfloat16), sel_j.astype(jnp.bfloat16),
        wqkv, bqkv, wo, bo, num_heads=num_heads)
    E, D = entities.shape[1], entities.shape[2]
    P = E * E
    # no-op slices when E*E % 8 == 0 and D % 128 == 0 (real model widths)
    return out_h[:, :P, :D], out_t[:, :P, :D]                                # rep_h, rep_t


# ---------------------------------------------------------------------------
# Pure numpy reference (mirrors the torch module with standard SDPA MHA)
# ---------------------------------------------------------------------------
def reference_forward(params, entities, mentions_flat, sentences, idx, num_heads):
    men = np.take(np.asarray(mentions_flat), idx["men_gather"], axis=0) * idx["valid"][:, :, None]
    sen = np.take(np.asarray(sentences), idx["sen_gather"], axis=0) * idx["valid"][:, :, None]
    index_m = idx["m_ids"][:, None, :] != idx["e_ids"][:, :, None]
    entities = np.asarray(entities)
    B, E, D = entities.shape
    M = men.shape[1]
    dk = D // num_heads

    def mha(p, q_pairs, mask_pairs, key, value):
        L = q_pairs.shape[1]
        Q = q_pairs @ np.asarray(p["wq"]).T + np.asarray(p["bq"])
        K = key @ np.asarray(p["wk"]).T + np.asarray(p["bk"])
        V = value @ np.asarray(p["wv"]).T + np.asarray(p["bv"])
        Q = Q.reshape(B, L, num_heads, dk).transpose(0, 2, 1, 3)
        K = K.reshape(B, M, num_heads, dk).transpose(0, 2, 1, 3)
        V = V.reshape(B, M, num_heads, dk).transpose(0, 2, 1, 3)
        s = np.einsum("bhld,bhmd->bhlm", Q, K) / math.sqrt(dk)
        s = np.where(mask_pairs[:, None, :, :], -1e9, s)
        s = s - s.max(-1, keepdims=True)
        pa = np.exp(s)
        pa = pa / pa.sum(-1, keepdims=True)
        ctx = np.einsum("bhlm,bhmd->bhld", pa, V)
        ctx = ctx.transpose(0, 2, 1, 3).reshape(B, L, D)
        return ctx @ np.asarray(p["wo"]).T + np.asarray(p["bo"])

    q1 = np.broadcast_to(entities[:, :, None, :], (B, E, E, D)).reshape(B, E * E, D)
    q2 = np.broadcast_to(entities[:, None, :, :], (B, E, E, D)).reshape(B, E * E, D)
    mask_h = np.broadcast_to(index_m[:, :, None, :], (B, E, E, M)).reshape(B, E * E, M)
    mask_t = np.broadcast_to(index_m[:, None, :, :], (B, E, E, M)).reshape(B, E * E, M)
    rep_h = mha(params["mha_h"], q2, mask_h, sen, men)
    rep_t = mha(params["mha_t"], q1, mask_t, sen, men)
    return rep_h, rep_t


# ---------------------------------------------------------------------------
# Example run
# ---------------------------------------------------------------------------
if __name__ == "__main__":
    D = 32            # rgcn_hidden_dim
    NUM_HEADS = 2     # att_head_num
    B = 2

    # doc0: 3 entities, 4 mentions, 2 sentences ; doc1: 2 entities, 3 mentions, 3 sentences
    section = np.array([[3, 4, 2],
                        [2, 3, 3]], dtype=np.int32)
    # info columns: <entity_id, entity_type, start_wid, end_wid, sentence_id, origin_sen_id, node_type>
    info = np.array([
        [0, 1, 0, 1, 0, 0, 1],
        [1, 1, 2, 3, 0, 0, 1],
        [0, 1, 5, 6, 1, 1, 1],
        [2, 1, 7, 8, 1, 1, 1],
        [3, 1, 0, 1, 2, 0, 1],
        [4, 1, 2, 3, 3, 1, 1],
        [3, 1, 4, 5, 4, 2, 1],
    ], dtype=np.int32)

    key = jax.random.PRNGKey(0)
    k_ent, k_men, k_sen, k_glob, k_h, k_t = jax.random.split(key, 6)

    entities_flat = jax.random.normal(k_ent, (5, D), jnp.float32)    # unused (as in torch)
    mentions_flat = jax.random.normal(k_men, (7, D), jnp.float32)
    sentences = jax.random.normal(k_sen, (5, D), jnp.float32)
    global_nodes = jax.random.normal(k_glob, (B, 3, D), jnp.float32)  # padded entity reps

    params = {"mha_h": init_mha_params(k_h, D),
              "mha_t": init_mha_params(k_t, D)}
    wqkv, bqkv, wo, bo = pack_params(params)          # hoisted transposes / bf16 / padding
    idx = build_indices(info, section)

    rep_h, rep_t = device_forward(
        global_nodes, mentions_flat, sentences,
        idx["men_gather"], idx["sen_gather"], idx["valid"],
        idx["m_ids"], idx["e_ids"], idx["sel_i"], idx["sel_j"],
        wqkv, bqkv, wo, bo, num_heads=NUM_HEADS)
    rep_h, rep_t = jax.block_until_ready((rep_h, rep_t))

    E = int(section[:, 0].max())
    assert rep_h.shape == (B, E * E, D)
    assert rep_t.shape == (B, E * E, D)
    assert bool(jnp.all(jnp.isfinite(rep_h))) and bool(jnp.all(jnp.isfinite(rep_t)))

    ref_h, ref_t = reference_forward(params, np.asarray(global_nodes),
                                     mentions_flat, sentences, idx, NUM_HEADS)

    # compare only pairs of REAL entities (rows touching padded entities are padding
    # artifacts: reference = uniform attention over padded mentions, kernel = bias-only)
    valid_pair = np.zeros((B, E * E), dtype=bool)
    for b in range(B):
        ne = int(section[b, 0])
        vp = np.zeros((E, E), dtype=bool)
        vp[:ne, :ne] = True
        valid_pair[b] = vp.reshape(-1)

    np.testing.assert_allclose(np.asarray(rep_h)[valid_pair], ref_h[valid_pair],
                               rtol=2e-2, atol=2e-2)
    np.testing.assert_allclose(np.asarray(rep_t)[valid_pair], ref_t[valid_pair],
                               rtol=2e-2, atol=2e-2)

    print("KERNEL_OK")
</pallas_src>

<mosaic_0001>
module attributes {stable_mosaic.version = 11 : i64} {
  func.func @_fused_local_rep_kernel(%arg0: i32, %arg1: memref<1x3x32xbf16, #tpu.memory_space<vmem>>, %arg2: memref<1x128x32xbf16, #tpu.memory_space<vmem>>, %arg3: memref<1x128x32xbf16, #tpu.memory_space<vmem>>, %arg4: memref<1x3x128xbf16, #tpu.memory_space<vmem>>, %arg5: memref<16x3xbf16, #tpu.memory_space<vmem>>, %arg6: memref<16x3xbf16, #tpu.memory_space<vmem>>, %arg7: memref<3x32x64xbf16, #tpu.memory_space<vmem>>, %arg8: memref<3x1x64xf32, #tpu.memory_space<vmem>>, %arg9: memref<2x32x128xbf16, #tpu.memory_space<vmem>>, %arg10: memref<2x1x128xf32, #tpu.memory_space<vmem>>, %arg11: memref<1x16x128xf32, #tpu.memory_space<vmem>>, %arg12: memref<1x16x128xf32, #tpu.memory_space<vmem>>) attributes {dimension_semantics = [#tpu.dimension_semantics<parallel>], iteration_bounds = array<i64: 2>, scalar_prefetch = 0 : i64, scratch_operands = 0 : i64, tpu.core_type = #tpu.core_type<tc>, window_params = [{transform_indices = @transform_0, window_bounds = array<i64: 1, 3, 32>}, {transform_indices = @transform_1, window_bounds = array<i64: 1, 128, 32>}, {transform_indices = @transform_2, window_bounds = array<i64: 1, 128, 32>}, {transform_indices = @transform_3, window_bounds = array<i64: 1, 3, 128>}, {pipeline_mode = #tpu.pipeline_mode<synchronous>, transform_indices = @transform_4, window_bounds = array<i64: 16, 3>}, {pipeline_mode = #tpu.pipeline_mode<synchronous>, transform_indices = @transform_5, window_bounds = array<i64: 16, 3>}, {pipeline_mode = #tpu.pipeline_mode<synchronous>, transform_indices = @transform_6, window_bounds = array<i64: 3, 32, 64>}, {pipeline_mode = #tpu.pipeline_mode<synchronous>, transform_indices = @transform_7, window_bounds = array<i64: 3, 1, 64>}, {pipeline_mode = #tpu.pipeline_mode<synchronous>, transform_indices = @transform_8, window_bounds = array<i64: 2, 32, 128>}, {pipeline_mode = #tpu.pipeline_mode<synchronous>, transform_indices = @transform_9, window_bounds = array<i64: 2, 1, 128>}, {transform_indices = @transform_10, window_bounds = array<i64: 1, 16, 128>}, {transform_indices = @transform_11, window_bounds = array<i64: 1, 16, 128>}]} {
    %c0 = arith.constant 0 : index
    %c0_0 = arith.constant 0 : index
    %c0_1 = arith.constant 0 : index
    %0 = vector.load %arg1[%c0, %c0_0, %c0_1] : memref<1x3x32xbf16, #tpu.memory_space<vmem>>, vector<1x3x32xbf16>
    %1 = vector.shape_cast %0 : vector<1x3x32xbf16> to vector<3x32xbf16>
    %c0_2 = arith.constant 0 : index
    %c0_3 = arith.constant 0 : index
    %c0_4 = arith.constant 0 : index
    %2 = vector.load %arg2[%c0_2, %c0_3, %c0_4] : memref<1x128x32xbf16, #tpu.memory_space<vmem>>, vector<1x128x32xbf16>
    %3 = vector.shape_cast %2 : vector<1x128x32xbf16> to vector<128x32xbf16>
    %c0_5 = arith.constant 0 : index
    %c0_6 = arith.constant 0 : index
    %c0_7 = arith.constant 0 : index
    %4 = vector.load %arg3[%c0_5, %c0_6, %c0_7] : memref<1x128x32xbf16, #tpu.memory_space<vmem>>, vector<1x128x32xbf16>
    %5 = vector.shape_cast %4 : vector<1x128x32xbf16> to vector<128x32xbf16>
    %c0_8 = arith.constant 0 : index
    %c0_9 = arith.constant 0 : index
    %c0_10 = arith.constant 0 : index
    %6 = vector.load %arg4[%c0_8, %c0_9, %c0_10] : memref<1x3x128xbf16, #tpu.memory_space<vmem>>, vector<1x3x128xbf16>
    %7 = vector.shape_cast %6 : vector<1x3x128xbf16> to vector<3x128xbf16>
    %c0_11 = arith.constant 0 : index
    %c0_12 = arith.constant 0 : index
    %8 = vector.load %arg5[%c0_11, %c0_12] : memref<16x3xbf16, #tpu.memory_space<vmem>>, vector<16x3xbf16>
    %c0_13 = arith.constant 0 : index
    %c0_14 = arith.constant 0 : index
    %9 = vector.load %arg6[%c0_13, %c0_14] : memref<16x3xbf16, #tpu.memory_space<vmem>>, vector<16x3xbf16>
    %c0_15 = arith.constant 0 : index
    %c0_16 = arith.constant 0 : index
    %c0_17 = arith.constant 0 : index
    %10 = vector.load %arg7[%c0_15, %c0_16, %c0_17] : memref<3x32x64xbf16, #tpu.memory_space<vmem>>, vector<1x32x64xbf16>
    %11 = vector.shape_cast %10 : vector<1x32x64xbf16> to vector<32x64xbf16>
    %cst = arith.constant dense<0.000000e+00> : vector<3x64xf32>
    %12 = tpu.matmul %1, %11, %cst {dimension_numbers = #tpu.dot_dimension_numbers<[1], [0], [0], [1], [0, 0, 1, 1], [], []>} : vector<3x32xbf16>, vector<32x64xbf16>, vector<3x64xf32> -> vector<3x64xf32>
    %c0_18 = arith.constant 0 : index
    %c0_19 = arith.constant 0 : index
    %c0_20 = arith.constant 0 : index
    %13 = vector.load %arg8[%c0_18, %c0_19, %c0_20] : memref<3x1x64xf32, #tpu.memory_space<vmem>>, vector<1x1x64xf32>
    %14 = vector.shape_cast %13 : vector<1x1x64xf32> to vector<1x64xf32>
    %15 = vector.broadcast %14 : vector<1x64xf32> to vector<3x64xf32>
    %16 = arith.addf %12, %15 : vector<3x64xf32>
    %cst_21 = arith.constant 2.500000e-01 : f32
    %17 = vector.broadcast %cst_21 : f32 to vector<3x64xf32>
    %18 = arith.mulf %16, %17 : vector<3x64xf32>
    %c1 = arith.constant 1 : index
    %c0_22 = arith.constant 0 : index
    %c0_23 = arith.constant 0 : index
    %19 = vector.load %arg7[%c1, %c0_22, %c0_23] : memref<3x32x64xbf16, #tpu.memory_space<vmem>>, vector<1x32x64xbf16>
    %20 = vector.shape_cast %19 : vector<1x32x64xbf16> to vector<32x64xbf16>
    %cst_24 = arith.constant dense<0.000000e+00> : vector<128x64xf32>
    %21 = tpu.matmul %3, %20, %cst_24 {dimension_numbers = #tpu.dot_dimension_numbers<[1], [0], [0], [1], [0, 0, 1, 1], [], []>} : vector<128x32xbf16>, vector<32x64xbf16>, vector<128x64xf32> -> vector<128x64xf32>
    %c1_25 = arith.constant 1 : index
    %c0_26 = arith.constant 0 : index
    %c0_27 = arith.constant 0 : index
    %22 = vector.load %arg8[%c1_25, %c0_26, %c0_27] : memref<3x1x64xf32, #tpu.memory_space<vmem>>, vector<1x1x64xf32>
    %23 = vector.shape_cast %22 : vector<1x1x64xf32> to vector<1x64xf32>
    %24 = vector.broadcast %23 : vector<1x64xf32> to vector<128x64xf32>
    %25 = arith.addf %21, %24 : vector<128x64xf32>
    %c2 = arith.constant 2 : index
    %c0_28 = arith.constant 0 : index
    %c0_29 = arith.constant 0 : index
    %26 = vector.load %arg7[%c2, %c0_28, %c0_29] : memref<3x32x64xbf16, #tpu.memory_space<vmem>>, vector<1x32x64xbf16>
    %27 = vector.shape_cast %26 : vector<1x32x64xbf16> to vector<32x64xbf16>
    %cst_30 = arith.constant dense<0.000000e+00> : vector<128x64xf32>
    %28 = tpu.matmul %5, %27, %cst_30 {dimension_numbers = #tpu.dot_dimension_numbers<[1], [0], [0], [1], [0, 0, 1, 1], [], []>} : vector<128x32xbf16>, vector<32x64xbf16>, vector<128x64xf32> -> vector<128x64xf32>
    %c2_31 = arith.constant 2 : index
    %c0_32 = arith.constant 0 : index
    %c0_33 = arith.constant 0 : index
    %29 = vector.load %arg8[%c2_31, %c0_32, %c0_33] : memref<3x1x64xf32, #tpu.memory_space<vmem>>, vector<1x1x64xf32>
    %30 = vector.shape_cast %29 : vector<1x1x64xf32> to vector<1x64xf32>
    %31 = vector.broadcast %30 : vector<1x64xf32> to vector<128x64xf32>
    %32 = arith.addf %28, %31 : vector<128x64xf32>
    %cst_34 = arith.constant dense<0.000000e+00> : vector<16x128xf32>
    %33 = tpu.matmul %8, %7, %cst_34 {dimension_numbers = #tpu.dot_dimension_numbers<[1], [0], [0], [1], [0, 0, 1, 1], [], []>} : vector<16x3xbf16>, vector<3x128xbf16>, vector<16x128xf32> -> vector<16x128xf32>
    %cst_35 = arith.constant dense<0.000000e+00> : vector<16x128xf32>
    %34 = tpu.matmul %9, %7, %cst_35 {dimension_numbers = #tpu.dot_dimension_numbers<[1], [0], [0], [1], [0, 0, 1, 1], [], []>} : vector<16x3xbf16>, vector<3x128xbf16>, vector<16x128xf32> -> vector<16x128xf32>
    %c0_36 = arith.constant 0 : index
    %c0_37 = arith.constant 0 : index
    %c0_38 = arith.constant 0 : index
    %35 = vector.load %arg9[%c0_36, %c0_37, %c0_38] : memref<2x32x128xbf16, #tpu.memory_space<vmem>>, vector<1x32x128xbf16>
    %36 = vector.shape_cast %35 : vector<1x32x128xbf16> to vector<32x128xbf16>
    %c0_39 = arith.constant 0 : index
    %c0_40 = arith.constant 0 : index
    %c0_41 = arith.constant 0 : index
    %37 = vector.load %arg10[%c0_39, %c0_40, %c0_41] : memref<2x1x128xf32, #tpu.memory_space<vmem>>, vector<1x1x128xf32>
    %38 = vector.shape_cast %37 : vector<1x1x128xf32> to vector<1x128xf32>
    %39 = vector.shape_cast %38 : vector<1x128xf32> to vector<1x128xf32>
    %40 = vector.broadcast %39 : vector<1x128xf32> to vector<16x128xf32>
    %41 = vector.extract_strided_slice %18 {offsets = [0, 0], sizes = [3, 16], strides = [1, 1]} : vector<3x64xf32> to vector<3x16xf32>
    %42 = arith.truncf %41 : vector<3x16xf32> to vector<3x16xbf16>
    %43 = vector.extract_strided_slice %25 {offsets = [0, 0], sizes = [128, 16], strides = [1, 1]} : vector<128x64xf32> to vector<128x16xf32>
    %44 = arith.truncf %43 : vector<128x16xf32> to vector<128x16xbf16>
    %45 = vector.extract_strided_slice %32 {offsets = [0, 0], sizes = [128, 16], strides = [1, 1]} : vector<128x64xf32> to vector<128x16xf32>
    %46 = arith.truncf %45 : vector<128x16xf32> to vector<128x16xbf16>
    %cst_42 = arith.constant dense<0.000000e+00> : vector<3x128xf32>
    %47 = tpu.matmul %42, %44, %cst_42 {dimension_numbers = #tpu.dot_dimension_numbers<[1], [1], [0], [0], [0, 0, 1, 0], [], []>} : vector<3x16xbf16>, vector<128x16xbf16>, vector<3x128xf32> -> vector<3x128xf32>
    %cst_43 = arith.constant dense<0xFF800000> : vector<3xf32>
    %48 = vector.multi_reduction <maximumf>, %47, %cst_43 [1] : vector<3x128xf32> to vector<3xf32>
    %49 = vector.shape_cast %48 : vector<3xf32> to vector<3x1xf32>
    %50 = vector.broadcast %49 : vector<3x1xf32> to vector<3x128xf32>
    %51 = arith.subf %47, %50 : vector<3x128xf32>
    %52 = math.exp %51 : vector<3x128xf32>
    %53 = arith.truncf %52 : vector<3x128xf32> to vector<3x128xbf16>
    %cst_44 = arith.constant dense<0.000000e+00> : vector<16x128xf32>
    %54 = tpu.matmul %9, %53, %cst_44 {dimension_numbers = #tpu.dot_dimension_numbers<[1], [0], [0], [1], [0, 0, 1, 1], [], []>} : vector<16x3xbf16>, vector<3x128xbf16>, vector<16x128xf32> -> vector<16x128xf32>
    %55 = arith.mulf %54, %33 : vector<16x128xf32>
    %cst_45 = arith.constant dense<0.000000e+00> : vector<16xf32>
    %56 = vector.multi_reduction <add>, %55, %cst_45 [1] : vector<16x128xf32> to vector<16xf32>
    %57 = vector.shape_cast %56 : vector<16xf32> to vector<16x1xf32>
    %cst_46 = arith.constant 1.000000e-30 : f32
    %58 = vector.broadcast %cst_46 : f32 to vector<16x1xf32>
    %59 = arith.maximumf %57, %58 : vector<16x1xf32>
    %60 = tpu.reciprocal %59 {approx = true} : vector<16x1xf32> -> vector<16x1xf32>
    %61 = arith.truncf %55 : vector<16x128xf32> to vector<16x128xbf16>
    %cst_47 = arith.constant dense<0.000000e+00> : vector<16x16xf32>
    %62 = tpu.matmul %61, %46, %cst_47 {dimension_numbers = #tpu.dot_dimension_numbers<[1], [0], [0], [1], [0, 0, 1, 1], [], []>} : vector<16x128xbf16>, vector<128x16xbf16>, vector<16x16xf32> -> vector<16x16xf32>
    %63 = vector.broadcast %60 : vector<16x1xf32> to vector<16x16xf32>
    %64 = arith.mulf %62, %63 : vector<16x16xf32>
    %65 = arith.truncf %64 : vector<16x16xf32> to vector<16x16xbf16>
    %66 = vector.extract_strided_slice %36 {offsets = [0, 0], sizes = [16, 128], strides = [1, 1]} : vector<32x128xbf16> to vector<16x128xbf16>
    %cst_48 = arith.constant dense<0.000000e+00> : vector<16x128xf32>
    %67 = tpu.matmul %65, %66, %cst_48 {dimension_numbers = #tpu.dot_dimension_numbers<[1], [0], [0], [1], [0, 0, 1, 1], [], []>} : vector<16x16xbf16>, vector<16x128xbf16>, vector<16x128xf32> -> vector<16x128xf32>
    %68 = arith.addf %40, %67 : vector<16x128xf32>
    %69 = vector.extract_strided_slice %18 {offsets = [0, 16], sizes = [3, 16], strides = [1, 1]} : vector<3x64xf32> to vector<3x16xf32>
    %70 = arith.truncf %69 : vector<3x16xf32> to vector<3x16xbf16>
    %71 = vector.extract_strided_slice %25 {offsets = [0, 16], sizes = [128, 16], strides = [1, 1]} : vector<128x64xf32> to vector<128x16xf32>
    %72 = arith.truncf %71 : vector<128x16xf32> to vector<128x16xbf16>
    %73 = vector.extract_strided_slice %32 {offsets = [0, 16], sizes = [128, 16], strides = [1, 1]} : vector<128x64xf32> to vector<128x16xf32>
    %74 = arith.truncf %73 : vector<128x16xf32> to vector<128x16xbf16>
    %cst_49 = arith.constant dense<0.000000e+00> : vector<3x128xf32>
    %75 = tpu.matmul %70, %72, %cst_49 {dimension_numbers = #tpu.dot_dimension_numbers<[1], [1], [0], [0], [0, 0, 1, 0], [], []>} : vector<3x16xbf16>, vector<128x16xbf16>, vector<3x128xf32> -> vector<3x128xf32>
    %cst_50 = arith.constant dense<0xFF800000> : vector<3xf32>
    %76 = vector.multi_reduction <maximumf>, %75, %cst_50 [1] : vector<3x128xf32> to vector<3xf32>
    %77 = vector.shape_cast %76 : vector<3xf32> to vector<3x1xf32>
    %78 = vector.broadcast %77 : vector<3x1xf32> to vector<3x128xf32>
    %79 = arith.subf %75, %78 : vector<3x128xf32>
    %80 = math.exp %79 : vector<3x128xf32>
    %81 = arith.truncf %80 : vector<3x128xf32> to vector<3x128xbf16>
    %cst_51 = arith.constant dense<0.000000e+00> : vector<16x128xf32>
    %82 = tpu.matmul %9, %81, %cst_51 {dimension_numbers = #tpu.dot_dimension_numbers<[1], [0], [0], [1], [0, 0, 1, 1], [], []>} : vector<16x3xbf16>, vector<3x128xbf16>, vector<16x128xf32> -> vector<16x128xf32>
    %83 = arith.mulf %82, %33 : vector<16x128xf32>
    %cst_52 = arith.constant dense<0.000000e+00> : vector<16xf32>
    %84 = vector.multi_reduction <add>, %83, %cst_52 [1] : vector<16x128xf32> to vector<16xf32>
    %85 = vector.shape_cast %84 : vector<16xf32> to vector<16x1xf32>
    %cst_53 = arith.constant 1.000000e-30 : f32
    %86 = vector.broadcast %cst_53 : f32 to vector<16x1xf32>
    %87 = arith.maximumf %85, %86 : vector<16x1xf32>
    %88 = tpu.reciprocal %87 {approx = true} : vector<16x1xf32> -> vector<16x1xf32>
    %89 = arith.truncf %83 : vector<16x128xf32> to vector<16x128xbf16>
    %cst_54 = arith.constant dense<0.000000e+00> : vector<16x16xf32>
    %90 = tpu.matmul %89, %74, %cst_54 {dimension_numbers = #tpu.dot_dimension_numbers<[1], [0], [0], [1], [0, 0, 1, 1], [], []>} : vector<16x128xbf16>, vector<128x16xbf16>, vector<16x16xf32> -> vector<16x16xf32>
    %91 = vector.broadcast %88 : vector<16x1xf32> to vector<16x16xf32>
    %92 = arith.mulf %90, %91 : vector<16x16xf32>
    %93 = arith.truncf %92 : vector<16x16xf32> to vector<16x16xbf16>
    %94 = vector.extract_strided_slice %36 {offsets = [16, 0], sizes = [16, 128], strides = [1, 1]} : vector<32x128xbf16> to vector<16x128xbf16>
    %cst_55 = arith.constant dense<0.000000e+00> : vector<16x128xf32>
    %95 = tpu.matmul %93, %94, %cst_55 {dimension_numbers = #tpu.dot_dimension_numbers<[1], [0], [0], [1], [0, 0, 1, 1], [], []>} : vector<16x16xbf16>, vector<16x128xbf16>, vector<16x128xf32> -> vector<16x128xf32>
    %96 = arith.addf %68, %95 : vector<16x128xf32>
    %c0_56 = arith.constant 0 : index
    %c0_57 = arith.constant 0 : index
    %c0_58 = arith.constant 0 : index
    %97 = vector.load %arg11[%c0_56, %c0_57, %c0_58] : memref<1x16x128xf32, #tpu.memory_space<vmem>>, vector<1x16x128xf32>
    %98 = vector.shape_cast %97 : vector<1x16x128xf32> to vector<16x128xf32>
    %99 = vector.shape_cast %96 : vector<16x128xf32> to vector<1x16x128xf32>
    tpu.vector_store %arg11[%c0_56, %c0_57, %c0_58], %99 {strides = array<i32>} : memref<1x16x128xf32, #tpu.memory_space<vmem>>, vector<1x16x128xf32>,
    %c1_59 = arith.constant 1 : index
    %c0_60 = arith.constant 0 : index
    %c0_61 = arith.constant 0 : index
    %100 = vector.load %arg9[%c1_59, %c0_60, %c0_61] : memref<2x32x128xbf16, #tpu.memory_space<vmem>>, vector<1x32x128xbf16>
    %101 = vector.shape_cast %100 : vector<1x32x128xbf16> to vector<32x128xbf16>
    %c1_62 = arith.constant 1 : index
    %c0_63 = arith.constant 0 : index
    %c0_64 = arith.constant 0 : index
    %102 = vector.load %arg10[%c1_62, %c0_63, %c0_64] : memref<2x1x128xf32, #tpu.memory_space<vmem>>, vector<1x1x128xf32>
    %103 = vector.shape_cast %102 : vector<1x1x128xf32> to vector<1x128xf32>
    %104 = vector.shape_cast %103 : vector<1x128xf32> to vector<1x128xf32>
    %105 = vector.broadcast %104 : vector<1x128xf32> to vector<16x128xf32>
    %106 = vector.extract_strided_slice %18 {offsets = [0, 32], sizes = [3, 16], strides = [1, 1]} : vector<3x64xf32> to vector<3x16xf32>
    %107 = arith.truncf %106 : vector<3x16xf32> to vector<3x16xbf16>
    %108 = vector.extract_strided_slice %25 {offsets = [0, 32], sizes = [128, 16], strides = [1, 1]} : vector<128x64xf32> to vector<128x16xf32>
    %109 = arith.truncf %108 : vector<128x16xf32> to vector<128x16xbf16>
    %110 = vector.extract_strided_slice %32 {offsets = [0, 32], sizes = [128, 16], strides = [1, 1]} : vector<128x64xf32> to vector<128x16xf32>
    %111 = arith.truncf %110 : vector<128x16xf32> to vector<128x16xbf16>
    %cst_65 = arith.constant dense<0.000000e+00> : vector<3x128xf32>
    %112 = tpu.matmul %107, %109, %cst_65 {dimension_numbers = #tpu.dot_dimension_numbers<[1], [1], [0], [0], [0, 0, 1, 0], [], []>} : vector<3x16xbf16>, vector<128x16xbf16>, vector<3x128xf32> -> vector<3x128xf32>
    %cst_66 = arith.constant dense<0xFF800000> : vector<3xf32>
    %113 = vector.multi_reduction <maximumf>, %112, %cst_66 [1] : vector<3x128xf32> to vector<3xf32>
    %114 = vector.shape_cast %113 : vector<3xf32> to vector<3x1xf32>
    %115 = vector.broadcast %114 : vector<3x1xf32> to vector<3x128xf32>
    %116 = arith.subf %112, %115 : vector<3x128xf32>
    %117 = math.exp %116 : vector<3x128xf32>
    %118 = arith.truncf %117 : vector<3x128xf32> to vector<3x128xbf16>
    %cst_67 = arith.constant dense<0.000000e+00> : vector<16x128xf32>
    %119 = tpu.matmul %8, %118, %cst_67 {dimension_numbers = #tpu.dot_dimension_numbers<[1], [0], [0], [1], [0, 0, 1, 1], [], []>} : vector<16x3xbf16>, vector<3x128xbf16>, vector<16x128xf32> -> vector<16x128xf32>
    %120 = arith.mulf %119, %34 : vector<16x128xf32>
    %cst_68 = arith.constant dense<0.000000e+00> : vector<16xf32>
    %121 = vector.multi_reduction <add>, %120, %cst_68 [1] : vector<16x128xf32> to vector<16xf32>
    %122 = vector.shape_cast %121 : vector<16xf32> to vector<16x1xf32>
    %cst_69 = arith.constant 1.000000e-30 : f32
    %123 = vector.broadcast %cst_69 : f32 to vector<16x1xf32>
    %124 = arith.maximumf %122, %123 : vector<16x1xf32>
    %125 = tpu.reciprocal %124 {approx = true} : vector<16x1xf32> -> vector<16x1xf32>
    %126 = arith.truncf %120 : vector<16x128xf32> to vector<16x128xbf16>
    %cst_70 = arith.constant dense<0.000000e+00> : vector<16x16xf32>
    %127 = tpu.matmul %126, %111, %cst_70 {dimension_numbers = #tpu.dot_dimension_numbers<[1], [0], [0], [1], [0, 0, 1, 1], [], []>} : vector<16x128xbf16>, vector<128x16xbf16>, vector<16x16xf32> -> vector<16x16xf32>
    %128 = vector.broadcast %125 : vector<16x1xf32> to vector<16x16xf32>
    %129 = arith.mulf %127, %128 : vector<16x16xf32>
    %130 = arith.truncf %129 : vector<16x16xf32> to vector<16x16xbf16>
    %131 = vector.extract_strided_slice %101 {offsets = [0, 0], sizes = [16, 128], strides = [1, 1]} : vector<32x128xbf16> to vector<16x128xbf16>
    %cst_71 = arith.constant dense<0.000000e+00> : vector<16x128xf32>
    %132 = tpu.matmul %130, %131, %cst_71 {dimension_numbers = #tpu.dot_dimension_numbers<[1], [0], [0], [1], [0, 0, 1, 1], [], []>} : vector<16x16xbf16>, vector<16x128xbf16>, vector<16x128xf32> -> vector<16x128xf32>
    %133 = arith.addf %105, %132 : vector<16x128xf32>
    %134 = vector.extract_strided_slice %18 {offsets = [0, 48], sizes = [3, 16], strides = [1, 1]} : vector<3x64xf32> to vector<3x16xf32>
    %135 = arith.truncf %134 : vector<3x16xf32> to vector<3x16xbf16>
    %136 = vector.extract_strided_slice %25 {offsets = [0, 48], sizes = [128, 16], strides = [1, 1]} : vector<128x64xf32> to vector<128x16xf32>
    %137 = arith.truncf %136 : vector<128x16xf32> to vector<128x16xbf16>
    %138 = vector.extract_strided_slice %32 {offsets = [0, 48], sizes = [128, 16], strides = [1, 1]} : vector<128x64xf32> to vector<128x16xf32>
    %139 = arith.truncf %138 : vector<128x16xf32> to vector<128x16xbf16>
    %cst_72 = arith.constant dense<0.000000e+00> : vector<3x128xf32>
    %140 = tpu.matmul %135, %137, %cst_72 {dimension_numbers = #tpu.dot_dimension_numbers<[1], [1], [0], [0], [0, 0, 1, 0], [], []>} : vector<3x16xbf16>, vector<128x16xbf16>, vector<3x128xf32> -> vector<3x128xf32>
    %cst_73 = arith.constant dense<0xFF800000> : vector<3xf32>
    %141 = vector.multi_reduction <maximumf>, %140, %cst_73 [1] : vector<3x128xf32> to vector<3xf32>
    %142 = vector.shape_cast %141 : vector<3xf32> to vector<3x1xf32>
    %143 = vector.broadcast %142 : vector<3x1xf32> to vector<3x128xf32>
    %144 = arith.subf %140, %143 : vector<3x128xf32>
    %145 = math.exp %144 : vector<3x128xf32>
    %146 = arith.truncf %145 : vector<3x128xf32> to vector<3x128xbf16>
    %cst_74 = arith.constant dense<0.000000e+00> : vector<16x128xf32>
    %147 = tpu.matmul %8, %146, %cst_74 {dimension_numbers = #tpu.dot_dimension_numbers<[1], [0], [0], [1], [0, 0, 1, 1], [], []>} : vector<16x3xbf16>, vector<3x128xbf16>, vector<16x128xf32> -> vector<16x128xf32>
    %148 = arith.mulf %147, %34 : vector<16x128xf32>
    %cst_75 = arith.constant dense<0.000000e+00> : vector<16xf32>
    %149 = vector.multi_reduction <add>, %148, %cst_75 [1] : vector<16x128xf32> to vector<16xf32>
    %150 = vector.shape_cast %149 : vector<16xf32> to vector<16x1xf32>
    %cst_76 = arith.constant 1.000000e-30 : f32
    %151 = vector.broadcast %cst_76 : f32 to vector<16x1xf32>
    %152 = arith.maximumf %150, %151 : vector<16x1xf32>
    %153 = tpu.reciprocal %152 {approx = true} : vector<16x1xf32> -> vector<16x1xf32>
    %154 = arith.truncf %148 : vector<16x128xf32> to vector<16x128xbf16>
    %cst_77 = arith.constant dense<0.000000e+00> : vector<16x16xf32>
    %155 = tpu.matmul %154, %139, %cst_77 {dimension_numbers = #tpu.dot_dimension_numbers<[1], [0], [0], [1], [0, 0, 1, 1], [], []>} : vector<16x128xbf16>, vector<128x16xbf16>, vector<16x16xf32> -> vector<16x16xf32>
    %156 = vector.broadcast %153 : vector<16x1xf32> to vector<16x16xf32>
    %157 = arith.mulf %155, %156 : vector<16x16xf32>
    %158 = arith.truncf %157 : vector<16x16xf32> to vector<16x16xbf16>
    %159 = vector.extract_strided_slice %101 {offsets = [16, 0], sizes = [16, 128], strides = [1, 1]} : vector<32x128xbf16> to vector<16x128xbf16>
    %cst_78 = arith.constant dense<0.000000e+00> : vector<16x128xf32>
    %160 = tpu.matmul %158, %159, %cst_78 {dimension_numbers = #tpu.dot_dimension_numbers<[1], [0], [0], [1], [0, 0, 1, 1], [], []>} : vector<16x16xbf16>, vector<16x128xbf16>, vector<16x128xf32> -> vector<16x128xf32>
    %161 = arith.addf %133, %160 : vector<16x128xf32>
    %c0_79 = arith.constant 0 : index
    %c0_80 = arith.constant 0 : index
    %c0_81 = arith.constant 0 : index
    %162 = vector.load %arg12[%c0_79, %c0_80, %c0_81] : memref<1x16x128xf32, #tpu.memory_space<vmem>>, vector<1x16x128xf32>
    %163 = vector.shape_cast %162 : vector<1x16x128xf32> to vector<16x128xf32>
    %164 = vector.shape_cast %161 : vector<16x128xf32> to vector<1x16x128xf32>
    tpu.vector_store %arg12[%c0_79, %c0_80, %c0_81], %164 {strides = array<i32>} : memref<1x16x128xf32, #tpu.memory_space<vmem>>, vector<1x16x128xf32>,
    return
  }
  func.func @transform_0(%arg0: i32) -> (i32, i32, i32) {
    %c0_i32 = arith.constant 0 : i32
    %c0_i32_0 = arith.constant 0 : i32
    %c0_i32_1 = arith.constant 0 : i32
    return %arg0, %c0_i32, %c0_i32_0 : i32, i32, i32
  }
  func.func @transform_1(%arg0: i32) -> (i32, i32, i32) {
    %c0_i32 = arith.constant 0 : i32
    %c0_i32_0 = arith.constant 0 : i32
    %c0_i32_1 = arith.constant 0 : i32
    return %arg0, %c0_i32, %c0_i32_0 : i32, i32, i32
  }
  func.func @transform_2(%arg0: i32) -> (i32, i32, i32) {
    %c0_i32 = arith.constant 0 : i32
    %c0_i32_0 = arith.constant 0 : i32
    %c0_i32_1 = arith.constant 0 : i32
    return %arg0, %c0_i32, %c0_i32_0 : i32, i32, i32
  }
  func.func @transform_3(%arg0: i32) -> (i32, i32, i32) {
    %c0_i32 = arith.constant 0 : i32
    %c0_i32_0 = arith.constant 0 : i32
    %c0_i32_1 = arith.constant 0 : i32
    return %arg0, %c0_i32, %c0_i32_0 : i32, i32, i32
  }
  func.func @transform_4(%arg0: i32) -> (i32, i32) {
    %c0_i32 = arith.constant 0 : i32
    %c0_i32_0 = arith.constant 0 : i32
    %c0_i32_1 = arith.constant 0 : i32
    return %c0_i32, %c0_i32_0 : i32, i32
  }
  func.func @transform_5(%arg0: i32) -> (i32, i32) {
    %c0_i32 = arith.constant 0 : i32
    %c0_i32_0 = arith.constant 0 : i32
    %c0_i32_1 = arith.constant 0 : i32
    return %c0_i32, %c0_i32_0 : i32, i32
  }
  func.func @transform_6(%arg0: i32) -> (i32, i32, i32) {
    %c0_i32 = arith.constant 0 : i32
    %c0_i32_0 = arith.constant 0 : i32
    %c0_i32_1 = arith.constant 0 : i32
    %c0_i32_2 = arith.constant 0 : i32
    return %c0_i32, %c0_i32_0, %c0_i32_1 : i32, i32, i32
  }
  func.func @transform_7(%arg0: i32) -> (i32, i32, i32) {
    %c0_i32 = arith.constant 0 : i32
    %c0_i32_0 = arith.constant 0 : i32
    %c0_i32_1 = arith.constant 0 : i32
    %c0_i32_2 = arith.constant 0 : i32
    return %c0_i32, %c0_i32_0, %c0_i32_1 : i32, i32, i32
  }
  func.func @transform_8(%arg0: i32) -> (i32, i32, i32) {
    %c0_i32 = arith.constant 0 : i32
    %c0_i32_0 = arith.constant 0 : i32
    %c0_i32_1 = arith.constant 0 : i32
    %c0_i32_2 = arith.constant 0 : i32
    return %c0_i32, %c0_i32_0, %c0_i32_1 : i32, i32, i32
  }
  func.func @transform_9(%arg0: i32) -> (i32, i32, i32) {
    %c0_i32 = arith.constant 0 : i32
    %c0_i32_0 = arith.constant 0 : i32
    %c0_i32_1 = arith.constant 0 : i32
    %c0_i32_2 = arith.constant 0 : i32
    return %c0_i32, %c0_i32_0, %c0_i32_1 : i32, i32, i32
  }
  func.func @transform_10(%arg0: i32) -> (i32, i32, i32) {
    %c0_i32 = arith.constant 0 : i32
    %c0_i32_0 = arith.constant 0 : i32
    %c0_i32_1 = arith.constant 0 : i32
    return %arg0, %c0_i32, %c0_i32_0 : i32, i32, i32
  }
  func.func @transform_11(%arg0: i32) -> (i32, i32, i32) {
    %c0_i32 = arith.constant 0 : i32
    %c0_i32_0 = arith.constant 0 : i32
    %c0_i32_1 = arith.constant 0 : i32
    return %arg0, %c0_i32, %c0_i32_0 : i32, i32, i32
  }
}

</mosaic_0001>

<bundles_post_ra>
// kernel: device_forward.1
= control target key start
LH: loop header
LB: loop body
LE: loop exit
PB: predicated region body
PF: predicated region fallthrough
CT: control target
= control target key end

     0   :  { %s2889_s17 = smov 0   ;;  %s3375_s0 = inlined_call_operand.vmem [shape: bf16[2,3,32], index: 0, kind: input, shape index: {}]   ;;  %s3376_s1 = inlined_call_operand.vmem [shape: bf16[2,128,32], index: 1, kind: input, shape index: {}]   ;;  %s3377_s2 = inlined_call_operand.vmem [shape: bf16[2,128,32], index: 2, kind: input, shape index: {}]   ;;  %s3378_s3 = inlined_call_operand.vmem [shape: bf16[2,3,128], index: 3, kind: input, shape index: {}]   ;;  %s3379_s4 = inlined_call_operand.vmem [shape: bf16[16,3], index: 4, kind: input, shape index: {}]   ;;  %s3380_s5 = inlined_call_operand.vmem [shape: bf16[16,3], index: 5, kind: input, shape index: {}]   ;;  %s3381_s6 = inlined_call_operand.vmem [shape: bf16[3,32,64], index: 6, kind: input, shape index: {}]   ;;  %s3382_s7 = inlined_call_operand.vmem [shape: f32[3,1,64], index: 7, kind: input, shape index: {}]   ;;  %s3383_s8 = inlined_call_operand.vmem [shape: bf16[2,32,128], index: 8, kind: input, shape index: {}]   ;;  %s3384_s9 = inlined_call_operand.vmem [shape: f32[2,1,128], index: 9, kind: input, shape index: {}]   ;;  %s3385_s10 = inlined_call_operand.vmem [shape: f32[2,16,128], index: 10, kind: output, shape index: {0}]   ;;  %s3386_s11 = inlined_call_operand.vmem [shape: f32[2,16,128], index: 11, kind: output, shape index: {1}]  }
   0x1 LB: > { %s2253_s18 = sadd.s32 4294967295, %s2821_s17   ;;  %p2257_p0 = scmp.ge.s32.totalorder %s2821_s17, 1  ;;  %s2821_s17 = sphi %s2889_s17, %s22_s17  }
   0x2   : > { %p368_p1 = scmp.lt.s32.totalorder %s2821_s17, 3 }
   0x4   : > { %p369_p2 = pnand %p2257_p0, %p368_p1 }
   0x5   : > { %v2762_v0 = vld [vmem:[%s3381_s6 + $0x10] sm:$0xff] (!%p369_p2)   ;;  %p426_p3 = scmp.lt.s32.totalorder (!%p369_p2), %s2253_s18, 1  ;;  %v2763_v1 = vld [vmem:[%s3381_s6 + $0x18] sm:$0xff] (!%p369_p2)   ;;  %v2823_v2 = vmov (!%p369_p2), 0.0   ;;  %v2772_v3 = vld [vmem:[%s3381_s6] sm:$0xff] (!%p369_p2)   ;;  %vm516_vm0 = vcmask (!%p369_p2), 261120  }
   0x6   : > { %372 = sbr.rel (%p369_p2) target bundleno = 3311 (0xcef), region = 60  ;;  %2476 = vmatprep.subr.bf16.mxu1 (!%p369_p2), %v2762_v0  ;;  %2468 = vmatprep.subr.bf16.mxu0 (!%p369_p2), %v2823_v2  ;;  %vm2824_vm1 = vmmov (!%p369_p2), 0   ;;  %v2773_v4 = vld [vmem:[%s3381_s6 + $0x8] sm:$0xff] (!%p369_p2)   ;;  %vm942_vm2 = vcmask (!%p369_p2), 1040384   ;;  %vm943_vm3 = vcmask (!%p369_p2), 1041408   ;;  %v2825_v8 = vmov (!%p369_p2), 65535  }
   0x7   : > { %2477 = vmatpush3.bf16.msra.mxu1 (!%p369_p2), %v2762_v0  ;;  %2472 = vmatprep.mubr.msk.bf16.mxu0 (!%p369_p2), %vm2824_vm1, %v2823_v2  ;;  %v944_v9 = vsel (!%p369_p2), %vm942_vm2, 4294967295, %v2825_v8  ;;  %v2967_v19 = vld [vmem:[%s3379_s4] sm:$0xff] (!%p369_p2)   ;;  %vm938_vm4 = vcmask (!%p369_p2), 23552   ;;  %vm1067_vm5 = vcmask (!%p369_p2), 130048   ;;  %vm1135_vm6 = vcmask (!%p369_p2), 1042432   ;;  %s2826_s21 = smov (!%p369_p2), 112  }
   0x8   : > { %2478 = vmatprep.subr.bf16.mxu1 (!%p369_p2), %v2763_v1  ;;  %2469 = vmatpush3.bf16.msra.mxu0 (!%p369_p2), %v2772_v3  ;;  %v2938_v11 = vsel (!%p369_p2), %vm943_vm3, %v944_v9, 0  ;;  %v2277_v21 = vld [vmem:[%s3382_s7 + $0x1] ss:$0 sm:$0xff] (!%p369_p2)  ;;  %v2268_v9 = vld [vmem:[%s3382_s7] ss:$0 sm:$0xff] (!%p369_p2)  ;;  %s2827_s22 = smov (!%p369_p2), 96  }
   0x9   : > { %2470 = vmatprep.subr.bf16.mxu0 (!%p369_p2), %v2823_v2 }
   0xb   : > { %2479 = vmatpush3.bf16.msra.mxu1 (!%p369_p2), %v2763_v1 }
   0xc   : > { %2516 = vmatprep.subr.bf16.mxu1 (!%p369_p2), %v2823_v2  ;;  %2471 = vmatpush3.bf16.msra.mxu0 (!%p369_p2), %v2773_v4 }
   0xd   : > { %s3388_s18 = smov (!%p426_p3, %s2253_s18), 1 }
   0xe   : > { %s2349_s25 = sshll.u32 %s3388_s18, 6  ;;  %s2258_s12 = sshll.u32 %s3388_s18, 1 }
   0xf   : > { %s2917_s28 = scalar_lea.vmem %s3376_s1, %s2349_s25  ;;  %s429_s15 = scalar_lea.vmem %s3375_s0, %s2258_s12 }
  0x10   : > { %v2764_v5 = vld [vmem:[%s2917_s28] sm:$0xff]   ;;  %v2765_v6 = vld [vmem:[%s2917_s28 + $0x8] sm:$0xff]   ;;  %v2766_v7 = vld [vmem:[%s2917_s28 + $0x10] sm:$0xff]   ;;  %s443_s20 = scalar_lea.vmem %s3378_s3, %s2258_s12  ;;  %s2946_s23 = scalar_lea.vmem %s3377_s2, %s2349_s25 }
  0x11   : > { %2480 = vmatprep.mubr.msk.bf16.mxu1 %vm516_vm0, %v2764_v5  ;;  %v2767_v10 = vld [vmem:[%s2917_s28 + $0x18] sm:$0xff]   ;;  %v2768_v12 = vld [vmem:[%s2917_s28 + $0x20] sm:$0xff]   ;;  %v2769_v16 = vld [vmem:[%s2917_s28 + $0x28] sm:$0xff]   ;;  %s2828_s25 = smov 80  }
  0x12   : > { %2481 = vmatmul.mubr.msk.bf16.vlgmr.msra.gmra.mrb[0].mxu1 %vm516_vm0, %v2765_v6  ;;  %v455_v13 = vld [vmem:[%s429_s15] sm:$0x3]  ;;  %v2770_v17 = vld [vmem:[%s2917_s28 + $0x30] sm:$0xff]   ;;  %v2771_v18 = vld [vmem:[%s2917_s28 + $0x38] sm:$0xff]   ;;  %s2351_s28 = sshll.u32 %s3388_s18, 4 }
  0x13   : > { %2484 = vmatprep.mubr.msk.bf16.mxu1 %vm516_vm0, %v2766_v7  ;;  %v488_v14 = vld [vmem:[%s443_s20] sm:$0x3]  ;;  %2473 = vmatmul.mubr.msk.bf16.vlgmr.msra.gmra.mrb[0].mxu0 %vm516_vm0, %v455_v13  ;;  %s448_s14 = scalar_lea.vmem %s3385_s10, %s2351_s28  ;;  %s453_s27 = scalar_lea.vmem %s3386_s11, %s2351_s28 }
  0x14   : > { %v2950_v15 = vand.u32 %v2938_v11, %v488_v14 }
  0x16   : > { %2517 = vmatpush3.bf16.msra.mxu1 %v2950_v15 }
  0x17   : > { %2528 = vmatprep.subr.bf16.mxu1 %v2823_v2 }
  0x1a   : > { %2485 = vmatmul.mubr.msk.bf16.gmra.mrb[4].mxu1 %vm516_vm0, %v2767_v10 }
  0x1b   : > { %2488 = vmatprep.mubr.msk.bf16.mxu1 %vm516_vm0, %v2768_v12 }
  0x22   : > { %2489 = vmatmul.mubr.msk.bf16.gmra.mrb[8].mxu1 %vm516_vm0, %v2769_v16 }
  0x23   : > { %2492 = vmatprep.mubr.msk.bf16.mxu1 %vm516_vm0, %v2770_v17 }
  0x2a   : > { %2493 = vmatmul.mubr.msk.bf16.gmra.mrb[12].mxu1 %vm516_vm0, %v2771_v18 }
  0x2b   : > { %2518 = vmatprep.mubr.msk.bf16.mxu1 %vm2824_vm1, %v2823_v2 }
  0x32   : > { %2519 = vmatmul.mubr.msk.bf16.vlgmr.msra.gmra.mrb[16].mxu1 %vm938_vm4, %v2967_v19 }
  0x33   : > { %2544 = vmatprep.mubr.msk.bf16.mxu1 %vm2824_vm1, %v2823_v2 }
  0xe5   : > { %v2482_v20 = vpop.f32.mrb[0].mxu1 }
  0xe6   : > { %v684_v22 = vpop.f32.mrb[1].mxu1  ;;  %v693_v24 = vadd.f32 %v2482_v20, %v2277_v21  ;;  %v554_v30 = vpop.f32.mrb[0].mxu0 }
  0xe7   : > { %v2483_v23 = vpop.f32.mrb[2].mxu1  ;;  %v685_v27 = vadd.f32 %v2277_v21, %v684_v22  ;;  %v2474_v32 = vpop.f32.mrb[1].mxu0  ;;  %v555_v10 = vadd.f32 %v2268_v9, %v554_v30  ;;  %v2776_v22 = vld [vmem:[%s3381_s6 + $0x28] sm:$0xff]   ;;  %v2783_v30 = vld [vmem:[%s2946_s23 + $0x30] sm:$0xff]  }
  0xe8   : > { %v696_v25 = vadd.f32 %v2483_v23, %v2277_v21  ;;  %v687_v26 = vpop.f32.mrb[3].mxu1  ;;  %v557_v33 = vpop.f32.mrb[2].mxu0  ;;  %v2777_v23 = vld [vmem:[%s2946_s23] sm:$0xff]   ;;  %v2784_v32 = vld [vmem:[%s2946_s23 + $0x38] sm:$0xff]  }
  0xe9   : > { %v688_v28 = vadd.f32 %v2277_v21, %v687_v26  ;;  %v2475_v36 = vpop.f32.mrb[3].mxu0  ;;  %v560_v12 = vmul.f32 0.25, %v555_v10  ;;  %2500 = vmatprep.mubr.msk.bf16.mxu0 %vm516_vm0, %v2777_v23  ;;  %v2780_v26 = vld [vmem:[%s2946_s23 + $0x18] sm:$0xff]  }
  0xea   : > { %v2976_v29 = vpack.c.bf16 %v696_v25, %v693_v24  ;;  %v2778_v24 = vld [vmem:[%s2946_s23 + $0x8] sm:$0xff]   ;;  %v2779_v25 = vld [vmem:[%s2946_s23 + $0x10] sm:$0xff]  }
  0xeb   : > { %v2978_v31 = vpack.c.bf16 %v688_v28, %v685_v27  ;;  %v3019_v14 = vpack.c.bf16 %v560_v12, %v560_v12  ;;  %v2781_v27 = vld [vmem:[%s2946_s23 + $0x20] sm:$0xff]   ;;  %v2782_v28 = vld [vmem:[%s2946_s23 + $0x28] sm:$0xff]  }
  0xec   : > { %v1075_v46 = vsel %vm1067_vm5, %v2976_v29, 0 }
  0xed   : > { %v1072_v34 = vsel %vm1067_vm5, %v2978_v31, 0  ;;  %v2486_v35 = vpop.f32.mrb[4].mxu1 }
  0xee   : > { %2529 = vmatpush3.bf16.xpose.msra.mxu1 %v1072_v34  ;;  %v709_v37 = vadd.f32 %v2486_v35, %v2277_v21  ;;  %v700_v38 = vpop.f32.mrb[5].mxu1 }
  0xef   : > { %v701_v39 = vadd.f32 %v2277_v21, %v700_v38  ;;  %v2487_v40 = vpop.f32.mrb[6].mxu1  ;;  %2530 = vmatprep.subr.bf16.mxu1 %v2823_v2  ;;  %v2301_v38 = vld [vmem:[%s3382_s7 + $0x2] ss:$0 sm:$0xff] }
  0xf0   : > { %v712_v41 = vadd.f32 %v2487_v40, %v2277_v21  ;;  %v703_v42 = vpop.f32.mrb[7].mxu1 }
  0xf1   : > { %v704_v43 = vadd.f32 %v2277_v21, %v703_v42 }
  0xf2   : > { %v2983_v44 = vpack.c.bf16 %v712_v41, %v709_v37  ;;  %v3060_v37 = vld [vmem:[%s3380_s5] sm:$0xff]  }
  0xf3   : > { %v2985_v45 = vpack.c.bf16 %v704_v43, %v701_v39 }
  0xf4   : > { %v1081_v5 = vsel %vm1067_vm5, %v2983_v44, 0 }
  0xf5   : > { %v2490_v47 = vpop.f32.mrb[8].mxu1  ;;  %v1078_v57 = vsel %vm1067_vm5, %v2985_v45, 0 }
  0xf6   : > { %2531 = vmatpush3.bf16.xpose.msra.mxu1 %v1075_v46  ;;  %v725_v48 = vadd.f32 %v2490_v47, %v2277_v21  ;;  %v716_v49 = vpop.f32.mrb[9].mxu1 }
  0xf7   : > { %2532 = vmatprep.subr.bf16.mxu1 %v2823_v2  ;;  %v717_v50 = vadd.f32 %v2277_v21, %v716_v49  ;;  %v2491_v51 = vpop.f32.mrb[10].mxu1 }
  0xf8   : > { %v728_v52 = vadd.f32 %v2491_v51, %v2277_v21  ;;  %v719_v53 = vpop.f32.mrb[11].mxu1 }
  0xf9   : > { %v720_v54 = vadd.f32 %v2277_v21, %v719_v53 }
  0xfa   : > { %v2990_v55 = vpack.c.bf16 %v728_v52, %v725_v48 }
  0xfb   : > { %v2992_v56 = vpack.c.bf16 %v720_v54, %v717_v50 }
  0xfc   : > { %v1087_v7 = vsel %vm1067_vm5, %v2990_v55, 0 }
  0xfd   : > { %v2494_v58 = vpop.f32.mrb[12].mxu1  ;;  %v1084_v6 = vsel %vm1067_vm5, %v2992_v56, 0 }
  0xfe   : > { %2533 = vmatpush3.bf16.xpose.msra.mxu1 %v1078_v57  ;;  %v741_v59 = vadd.f32 %v2494_v58, %v2277_v21  ;;  %v732_v60 = vpop.f32.mrb[13].mxu1 }
  0xff   : > { %2534 = vmatprep.subr.bf16.mxu1 %v2823_v2  ;;  %v733_v61 = vadd.f32 %v2277_v21, %v732_v60  ;;  %v2495_v62 = vpop.f32.mrb[14].mxu1 }
 0x100   : > { %v744_v63 = vadd.f32 %v2495_v62, %v2277_v21  ;;  %v735_v0 = vpop.f32.mrb[15].mxu1 }
 0x101   : > { %v736_v1 = vadd.f32 %v2277_v21, %v735_v0  ;;  %v2775_v21 = vld [vmem:[%s3381_s6 + $0x20] sm:$0xff]  }
 0x102   : > { %v2997_v3 = vpack.c.bf16 %v744_v63, %v741_v59  ;;  %2496 = vmatprep.subr.bf16.mxu0 %v2775_v21 }
 0x103   : > { %v2999_v4 = vpack.c.bf16 %v736_v1, %v733_v61  ;;  %2497 = vmatpush3.bf16.msra.mxu0 %v2775_v21 }
 0x104   : > { %v1093_v13 = vsel %vm1067_vm5, %v2997_v3, 0  ;;  %2498 = vmatprep.subr.bf16.mxu0 %v2776_v22 }
 0x105   : > { %v1090_v8 = vsel %vm1067_vm5, %v2999_v4, 0  ;;  %v3025_v16 = vpop.f32.mrb[16].mxu1 }
 0x106   : > { %2535 = vmatpush3.bf16.xpose.msra.mxu1 %v1081_v5  ;;  %v2520_v17 = vpop.f32.mrb[17].mxu1 }
 0x107   : > { %2536 = vmatprep.subr.bf16.mxu1 %v2823_v2  ;;  %v3027_v18 = vpop.f32.mrb[18].mxu1  ;;  %2499 = vmatpush3.bf16.msra.mxu0 %v2776_v22 }
 0x108   : > { %v2521_v20 = vpop.f32.mrb[19].mxu1  ;;  %2522 = vmatprep.subr.bf16.mxu0 %v2823_v2 }
 0x10a   : > { %2501 = vmatmul.mubr.msk.bf16.vlgmr.msra.gmra.mrb[4].mxu0 %vm516_vm0, %v2778_v24 }
 0x10b   : > { %2504 = vmatprep.mubr.msk.bf16.mxu0 %vm516_vm0, %v2779_v25  ;;  %2523 = vmatpush3.bf16.msra.mxu0 %v2950_v15 }
 0x10c   : > { %2548 = vmatprep.subr.bf16.mxu0 %v2823_v2 }
 0x10e   : > { %2537 = vmatpush3.bf16.xpose.msra.mxu1 %v1084_v6 }
 0x10f   : > { %2538 = vmatprep.subr.bf16.mxu1 %v2823_v2 }
 0x112   : > { %2505 = vmatmul.mubr.msk.bf16.gmra.mrb[8].mxu0 %vm516_vm0, %v2780_v26 }
 0x113   : > { %2508 = vmatprep.mubr.msk.bf16.mxu0 %vm516_vm0, %v2781_v27 }
 0x116   : > { %2539 = vmatpush3.bf16.xpose.msra.mxu1 %v1087_v7 }
 0x117   : > { %2540 = vmatprep.subr.bf16.mxu1 %v2823_v2 }
 0x11a   : > { %2509 = vmatmul.mubr.msk.bf16.gmra.mrb[12].mxu0 %vm516_vm0, %v2782_v28 }
 0x11b   : > { %2512 = vmatprep.mubr.msk.bf16.mxu0 %vm516_vm0, %v2783_v30 }
 0x11e   : > { %2541 = vmatpush3.bf16.xpose.msra.mxu1 %v1090_v8 }
 0x11f   : > { %2542 = vmatprep.subr.bf16.mxu1 %v2823_v2 }
 0x122   : > { %2513 = vmatmul.mubr.msk.bf16.gmra.mrb[16].mxu0 %vm516_vm0, %v2784_v32 }
 0x123   : > { %2524 = vmatprep.mubr.msk.bf16.mxu0 %vm2824_vm1, %v2823_v2 }
 0x126   : > { %2543 = vmatpush3.bf16.xpose.msra.mxu1 %v1093_v13 }
 0x127   : > { %2600 = vmatprep.subr.bf16.mxu1 %v2823_v2 }
 0x12a   : > { %2525 = vmatmul.mubr.msk.bf16.vlgmr.msra.gmra.mrb[20].mxu0 %vm938_vm4, %v3060_v37 }
 0x12b   : > { %2550 = vmatprep.mubr.msk.bf16.mxu0 %vm2824_vm1, %v2823_v2 }
 0x12d   : > { %2545 = vmatmul.mubr.msk.bf16.vlgmr.msra.gmra.mrb[20].mxu1 %vm1067_vm5, %v3019_v14 }
 0x12e   : > { %2602 = vmatprep.mubr.msk.bf16.mxu1 %vm2824_vm1, %v2823_v2 }
 0x1dd   : > { %v2502_v39 = vpop.f32.mrb[4].mxu0 }
 0x1de   : > { %v879_v40 = vadd.f32 %v2502_v39, %v2301_v38  ;;  %v870_v41 = vpop.f32.mrb[5].mxu0 }
 0x1df   : > { %v871_v42 = vadd.f32 %v2301_v38, %v870_v41  ;;  %v2503_v43 = vpop.f32.mrb[6].mxu0 }
 0x1e0   : > { %v882_v46 = vadd.f32 %v2503_v43, %v2301_v38  ;;  %v873_v47 = vpop.f32.mrb[7].mxu0 }
 0x1e1   : > { %v874_v48 = vadd.f32 %v2301_v38, %v873_v47 }
 0x1e2   : > { %v3069_v49 = vpack.c.bf16 %v882_v46, %v879_v40 }
 0x1e3   : > { %v3071_v50 = vpack.c.bf16 %v874_v48, %v871_v42 }
 0x1e5   : > { %v2506_v51 = vpop.f32.mrb[8].mxu0 }
 0x1e6   : > { %v895_v52 = vadd.f32 %v2506_v51, %v2301_v38  ;;  %v886_v53 = vpop.f32.mrb[9].mxu0  ;;  %v2786_v51 = vld [vmem:[%s3383_s8] sm:$0xff]  }
 0x1e7   : > { %v887_v54 = vadd.f32 %v2301_v38, %v886_v53  ;;  %v2507_v57 = vpop.f32.mrb[10].mxu0 }
 0x1e8   : > { %v898_v58 = vadd.f32 %v2507_v57, %v2301_v38  ;;  %v889_v59 = vpop.f32.mrb[11].mxu0 }
 0x1e9   : > { %v890_v60 = vadd.f32 %v2301_v38, %v889_v59 }
 0x1ea   : > { %v3073_v61 = vpack.c.bf16 %v898_v58, %v895_v52 }
 0x1eb   : > { %v3075_v62 = vpack.c.bf16 %v890_v60, %v887_v54 }
 0x1ed   : > { %v2510_v63 = vpop.f32.mrb[12].mxu0 }
 0x1ee   : > { %v911_v0 = vadd.f32 %v2510_v63, %v2301_v38  ;;  %v902_v1 = vpop.f32.mrb[13].mxu0 }
 0x1ef   : > { %v903_v5 = vadd.f32 %v2301_v38, %v902_v1  ;;  %v2511_v6 = vpop.f32.mrb[14].mxu0 }
 0x1f0   : > { %v914_v7 = vadd.f32 %v2511_v6, %v2301_v38  ;;  %v905_v8 = vpop.f32.mrb[15].mxu0 }
 0x1f1   : > { %v906_v9 = vadd.f32 %v2301_v38, %v905_v8 }
 0x1f2   : > { %v3077_v10 = vpack.c.bf16 %v914_v7, %v911_v0 }
 0x1f3   : > { %v3079_v12 = vpack.c.bf16 %v906_v9, %v903_v5 }
 0x1f5   : > { %v2514_v13 = vpop.f32.mrb[16].mxu0 }
 0x1f6   : > { %v927_v17 = vadd.f32 %v2514_v13, %v2301_v38  ;;  %v918_v20 = vpop.f32.mrb[17].mxu0 }
 0x1f7   : > { %v919_v21 = vadd.f32 %v2301_v38, %v918_v20  ;;  %v2515_v22 = vpop.f32.mrb[18].mxu0 }
 0x1f8   : > { %v930_v23 = vadd.f32 %v2515_v22, %v2301_v38  ;;  %v921_v24 = vpop.f32.mrb[19].mxu0 }
 0x1f9   : > { %v922_v25 = vadd.f32 %v2301_v38, %v921_v24 }
 0x1fa   : > { %v3081_v26 = vpack.c.bf16 %v930_v23, %v927_v17 }
 0x1fb   : > { %v3083_v27 = vpack.c.bf16 %v922_v25, %v919_v21 }
 0x200   : > { %v1129_v15 = vpop.f32.mrb[20].mxu1 }
 0x201   : > { %v2546_v33 = vpop.f32.mrb[21].mxu1  ;;  %v1136_v34 = vsel %vm1135_vm6, %v1129_v15, -inf }
 0x202   : > { %1137 = vmax.xlane.f32.xlu0 %v1136_v34  ;;  %v1132_v35 = vpop.f32.mrb[22].mxu1 }
 0x203   : > { %v2547_v36 = vpop.f32.mrb[23].mxu1 }
 0x28f   : > { %v1138_v28 = vpop.xlane.xlu0 %1137 }
 0x290   : > { %v1139_v30 = vsub.f32 %v1129_v15, %v1138_v28  ;;  %v3107_v15 = vpop.f32.mrb[20].mxu0 }
 0x291   : > { %v2526_v36 = vpop.f32.mrb[21].mxu0 }
 0x292   : > { %v1140_v32 = vmul.f32 1.442695, %v1139_v30  ;;  %v3109_v38 = vpop.f32.mrb[22].mxu0 }
 0x293   : > { %v2527_v39 = vpop.f32.mrb[23].mxu0 }
 0x294   : > { %2790 = vpow2.f32 %v1140_v32 }
 0x29e   : > { %v2791_v33 = vpop.eup %2790 }
 0x29f   : > { %v1142_v34 = vpack.c.bf16 %v2791_v33, %v2791_v33 }
 0x2a1   : > { %v1144_v35 = vand.u32 %v1142_v34, %v2938_v11 }
 0x2a3   : > { %2549 = vmatpush3.bf16.msra.mxu0 %v1144_v35 }
 0x2a4   : > { %2554 = vmatprep.subr.bf16.mxu0 %v2823_v2 }
 0x2a6   : > { %2551 = vmatmul.mubr.msk.bf16.vlgmr.msra.gmra.mrb[24].mxu0 %vm938_vm4, %v3060_v37 }
 0x2a7   : > { %2555 = vmatpush3.bf16.msra.mxu0 %v3071_v50  ;;  %2570 = vmatprep.mubr.msk.bf16.mxu0 %vm2824_vm1, %v2823_v2 }
 0x2a8   : > { %2556 = vmatprep.subr.bf16.mxu0 %v2823_v2 }
 0x2ab   : > { %2557 = vmatpush3.bf16.msra.mxu0 %v3069_v49 }
 0x2ac   : > { %2558 = vmatprep.subr.bf16.mxu0 %v2823_v2 }
 0x2af   : > { %2559 = vmatpush3.bf16.msra.mxu0 %v3075_v62 }
 0x2b0   : > { %2560 = vmatprep.subr.bf16.mxu0 %v2823_v2 }
 0x2b3   : > { %2561 = vmatpush3.bf16.msra.mxu0 %v3073_v61 }
 0x2b4   : > { %2562 = vmatprep.subr.bf16.mxu0 %v2823_v2 }
 0x2b7   : > { %2563 = vmatpush3.bf16.msra.mxu0 %v3079_v12 }
 0x2b8   : > { %2564 = vmatprep.subr.bf16.mxu0 %v2823_v2 }
 0x2bb   : > { %2565 = vmatpush3.bf16.msra.mxu0 %v3077_v10 }
 0x2bc   : > { %2566 = vmatprep.subr.bf16.mxu0 %v2823_v2 }
 0x2bf   : > { %2567 = vmatpush3.bf16.msra.mxu0 %v3083_v27 }
 0x2c0   : > { %2568 = vmatprep.subr.bf16.mxu0 %v2823_v2 }
 0x2c3   : > { %2569 = vmatpush3.bf16.msra.mxu0 %v3081_v26 }
 0x2c4   : > { %2574 = vmatprep.subr.bf16.mxu0 %v2823_v2 }
 0x379   : > { %v1180_v40 = vpop.f32.mrb[24].mxu0 }
 0x37a   : > { %v1187_v41 = vmul.f32 %v1180_v40, %v3025_v16  ;;  %v2552_v42 = vpop.f32.mrb[25].mxu0 }
 0x37b   : > { %v1183_v43 = vpop.f32.mrb[26].mxu0 }
 0x37c   : > { %v1188_v46 = vmul.f32 %v1183_v43, %v3027_v18  ;;  %1189 = vadd.xlane.f32.xlu0 %v1187_v41  ;;  %v2553_v47 = vpop.f32.mrb[27].mxu0 }
 0x37e   : > { %v1197_v48 = vpack.c.bf16 %v1188_v46, %v1187_v41  ;;  %1191 = vadd.xlane.f32.xlu1 %v1188_v46 }
 0x380   : > { %2571 = vmatmul.mubr.bf16.vlgmr.msra.gmra.mrb[28].mxu0 %v1197_v48 }
 0x381   : > { %2576 = vmatprep.mubr.msk.bf16.mxu0 %vm2824_vm1, %v2823_v2  ;;  %2575 = vmatpush3.bf16.msra.mxu0 %v2786_v51 }
 0x382   : > { %2580 = vmatprep.subr.bf16.mxu0 %v2823_v2 }
 0x38f   : > { %1305 = vrot.lane.b32.xlu1 %v2978_v31, %s2826_s21 }
 0x392   : > { %1307 = vrot.lane.b32.xlu0 %v2976_v29, %s2826_s21 }
 0x393   : > { %1309 = vrot.lane.b32.xlu1 %v2985_v45, %s2826_s21 }
 0x396   : > { %1315 = vrot.lane.b32.xlu0 %v2990_v55, %s2826_s21 }
 0x397   : > { %1311 = vrot.lane.b32.xlu1 %v2983_v44, %s2826_s21 }
 0x39a   : > { %1319 = vrot.lane.b32.xlu0 %v2997_v3, %s2826_s21 }
 0x39b   : > { %1313 = vrot.lane.b32.xlu1 %v2992_v56, %s2826_s21 }
 0x39f   : > { %1317 = vrot.lane.b32.xlu1 %v2999_v4, %s2826_s21 }
 0x3a3   : > { %1295 = vrot.lane.b32.xlu1 %v3019_v14, %s2826_s21 }
 0x3a7   : > { %1458 = vrot.lane.b32.xlu1 %v3071_v50, %s2826_s21 }
 0x3ab   : > { %1460 = vrot.lane.b32.xlu1 %v3069_v49, %s2826_s21 }
 0x3af   : > { %1462 = vrot.lane.b32.xlu1 %v3075_v62, %s2826_s21 }
 0x3b3   : > { %1464 = vrot.lane.b32.xlu1 %v3073_v61, %s2826_s21 }
 0x3b7   : > { %1466 = vrot.lane.b32.xlu1 %v3079_v12, %s2826_s21 }
 0x3bb   : > { %1468 = vrot.lane.b32.xlu1 %v3077_v10, %s2826_s21 }
 0x3bf   : > { %1470 = vrot.lane.b32.xlu1 %v3083_v27, %s2826_s21 }
 0x3c3   : > { %1595 = vrot.lane.b32.xlu1 %v2978_v31, %s2827_s22 }
 0x3c7   : > { %1597 = vrot.lane.b32.xlu1 %v2976_v29, %s2827_s22 }
 0x3cb   : > { %1599 = vrot.lane.b32.xlu1 %v2985_v45, %s2827_s22 }
 0x3cf   : > { %1601 = vrot.lane.b32.xlu1 %v2983_v44, %s2827_s22 }
 0x3d3   : > { %1603 = vrot.lane.b32.xlu1 %v2992_v56, %s2827_s22 }
 0x3d7   : > { %1605 = vrot.lane.b32.xlu1 %v2990_v55, %s2827_s22 }
 0x3db   : > { %1609 = vrot.lane.b32.xlu1 %v2997_v3, %s2827_s22 }
 0x409   : > { %v1190_v52 = vpop.xlane.xlu0 %1189 }
 0x40a   : > { %v1193_v54 = vmax.f32 %v1190_v52, 1e-30 }
 0x40b   : > { %v1192_v53 = vpop.xlane.xlu1 %1191 }
 0x40c   : > { %v1194_v57 = vmax.f32 %v1192_v53, 1e-30  ;;  %2792 = vrcp.f32 %v1193_v54 }
 0x40d   : > { %v1308_v13 = vpop.permute.xlu0 %1307 }
 0x40e   : > { %2794 = vrcp.f32 %v1194_v57  ;;  %v1328_v17 = vsel %vm1067_vm5, %v1308_v13, 0 }
 0x40f   : > { %v1306_v7 = vpop.permute.xlu1 %1305 }
 0x410   : > { %v1325_v9 = vsel %vm1067_vm5, %v1306_v7, 0 }
 0x411   : > { %v1316_v28 = vpop.permute.xlu0 %1315 }
 0x412   : > { %v1340_v30 = vsel %vm1067_vm5, %v1316_v28, 0 }
 0x413   : > { %v1310_v20 = vpop.permute.xlu1 %1309 }
 0x414   : > { %v1331_v21 = vsel %vm1067_vm5, %v1310_v20, 0 }
 0x415   : > { %v1320_v34 = vpop.permute.xlu0 %1319 }
 0x416   : > { %v2793_v59 = vpop.eup %2792  ;;  %v1346_v35 = vsel %vm1067_vm5, %v1320_v34, 0 }
 0x417   : > { %v1312_v22 = vpop.permute.xlu1 %1311 }
 0x418   : > { %v2795_v63 = vpop.eup %2794  ;;  %v1334_v23 = vsel %vm1067_vm5, %v1312_v22, 0 }
 0x41b   : > { %v1314_v24 = vpop.permute.xlu1 %1313 }
 0x41c   : > { %v1337_v25 = vsel %vm1067_vm5, %v1314_v24, 0 }
 0x41f   : > { %v1318_v32 = vpop.permute.xlu1 %1317 }
 0x420   : > { %v1343_v33 = vsel %vm1067_vm5, %v1318_v32, 0 }
 0x423   : > { %v1296_v36 = vpop.permute.xlu1 %1295 }
 0x427   : > { %v1459_v51 = vpop.permute.xlu1 %1458 }
 0x42b   : > { %v1461_v54 = vpop.permute.xlu1 %1460 }
 0x453   : > { %v1232_v58 = vpop.f32.mrb[28].mxu0 }
 0x454   : > { %v2572_v60 = vpop.f32.mrb[29].mxu0  ;;  %v1239_v1 = vmul.f32 %v2793_v59, %v1232_v58  ;;  %v1463_v58 = vpop.permute.xlu1 %1462 }
 0x455   : > { %v1235_v0 = vpop.f32.mrb[30].mxu0 }
 0x456   : > { %v1240_v5 = vmul.f32 %v2795_v63, %v1235_v0  ;;  %v2573_v6 = vpop.f32.mrb[31].mxu0 }
 0x458   : > { %v1241_v8 = vpack.c.bf16 %v1240_v5, %v1239_v1  ;;  %v1465_v59 = vpop.permute.xlu1 %1464 }
 0x45a   : > { %2577 = vmatmul.mubr.msk.bf16.vlgmr.msra.gmra.mrb[32].mxu0 %vm1067_vm5, %v1241_v8 }
 0x45b   : > { %2581 = vmatpush3.bf16.xpose.msra.mxu0 %v1325_v9  ;;  %2596 = vmatprep.mubr.msk.bf16.mxu0 %vm2824_vm1, %v2823_v2 }
 0x45c   : > { %2582 = vmatprep.subr.bf16.mxu0 %v2823_v2  ;;  %v1467_v60 = vpop.permute.xlu1 %1466 }
 0x460   : > { %v1469_v63 = vpop.permute.xlu1 %1468 }
 0x463   : > { %2583 = vmatpush3.bf16.xpose.msra.mxu0 %v1328_v17 }
 0x464   : > { %2584 = vmatprep.subr.bf16.mxu0 %v2823_v2 }
 0x46b   : > { %2585 = vmatpush3.bf16.xpose.msra.mxu0 %v1331_v21 }
 0x46c   : > { %2586 = vmatprep.subr.bf16.mxu0 %v2823_v2 }
 0x473   : > { %2587 = vmatpush3.bf16.xpose.msra.mxu0 %v1334_v23 }
 0x474   : > { %2588 = vmatprep.subr.bf16.mxu0 %v2823_v2 }
 0x47b   : > { %2589 = vmatpush3.bf16.xpose.msra.mxu0 %v1337_v25 }
 0x47c   : > { %2590 = vmatprep.subr.bf16.mxu0 %v2823_v2 }
 0x483   : > { %2591 = vmatpush3.bf16.xpose.msra.mxu0 %v1340_v30 }
 0x484   : > { %2592 = vmatprep.subr.bf16.mxu0 %v2823_v2 }
 0x48b   : > { %2593 = vmatpush3.bf16.xpose.msra.mxu0 %v1343_v33  ;;  %v2787_v33 = vld [vmem:[%s3383_s8 + $0x8] sm:$0xff]  }
 0x48c   : > { %2594 = vmatprep.subr.bf16.mxu0 %v2823_v2 }
 0x493   : > { %2595 = vmatpush3.bf16.xpose.msra.mxu0 %v1346_v35 }
 0x494   : > { %2626 = vmatprep.subr.bf16.mxu0 %v2823_v2 }
 0x49a   : > { %2597 = vmatmul.mubr.msk.bf16.vlgmr.msra.gmra.mrb[36].mxu0 %vm1067_vm5, %v1296_v36 }
 0x49b   : > { %2628 = vmatprep.mubr.msk.bf16.mxu0 %vm2824_vm1, %v2823_v2  ;;  %2627 = vmatpush3.bf16.msra.mxu0 %v2787_v33 }
 0x49c   : > { %2652 = vmatprep.subr.bf16.mxu0 %v2823_v2 }
 0x56d   : > { %v1382_v39 = vpop.f32.mrb[36].mxu0 }
 0x56e   : > { %v2598_v40 = vpop.f32.mrb[37].mxu0  ;;  %v1388_v41 = vsel %vm1135_vm6, %v1382_v39, -inf }
 0x56f   : > { %1389 = vmax.xlane.f32.xlu0 %v1388_v41  ;;  %v1385_v42 = vpop.f32.mrb[38].mxu0 }
 0x570   : > { %v2599_v43 = vpop.f32.mrb[39].mxu0 }
 0x585   : > { %1472 = vrot.lane.b32.xlu0 %v3081_v26, %s2826_s21 }
 0x589   : > { %1607 = vrot.lane.b32.xlu0 %v2999_v4, %s2827_s22 }
 0x58d   : > { %1593 = vrot.lane.b32.xlu0 %v3019_v14, %s2827_s22 }
 0x5fc   : > { %v1390_v46 = vpop.xlane.xlu0 %1389 }
 0x5fd   : > { %v1391_v47 = vsub.f32 %v1382_v39, %v1390_v46 }
 0x5ff   : > { %v1392_v48 = vmul.f32 1.442695, %v1391_v47 }
 0x600   : > { %v1473_v0 = vpop.permute.xlu0 %1472 }
 0x601   : > { %2796 = vpow2.f32 %v1392_v48 }
 0x60b   : > { %v2797_v52 = vpop.eup %2796 }
 0x60c   : > { %v1394_v53 = vpack.c.bf16 %v2797_v52, %v2797_v52 }
 0x60e   : > { %v1396_v57 = vand.u32 %v1394_v53, %v2938_v11 }
 0x610   : > { %2601 = vmatpush3.bf16.msra.mxu1 %v1396_v57 }
 0x611   : > { %2606 = vmatprep.subr.bf16.mxu1 %v2823_v2 }
 0x613   : > { %2603 = vmatmul.mubr.msk.bf16.vlgmr.msra.gmra.mrb[24].mxu1 %vm938_vm4, %v3060_v37  ;;  %v1471_v37 = vpop.permute.xlu1 %1470 }
 0x614   : > { %2607 = vmatpush3.bf16.msra.mxu1 %v1459_v51  ;;  %2622 = vmatprep.mubr.msk.bf16.mxu1 %vm2824_vm1, %v2823_v2 }
 0x615   : > { %2608 = vmatprep.subr.bf16.mxu1 %v2823_v2 }
 0x617   : > { %v1596_v13 = vpop.permute.xlu1 %1595 }
 0x618   : > { %2609 = vmatpush3.bf16.msra.mxu1 %v1461_v54  ;;  %v1615_v20 = vsel %vm1067_vm5, %v1596_v13, 0 }
 0x619   : > { %2610 = vmatprep.subr.bf16.mxu1 %v2823_v2 }
 0x61b   : > { %v1598_v21 = vpop.permute.xlu1 %1597 }
 0x61c   : > { %2611 = vmatpush3.bf16.msra.mxu1 %v1463_v58 }
 0x61d   : > { %2612 = vmatprep.subr.bf16.mxu1 %v2823_v2 }
 0x620   : > { %2613 = vmatpush3.bf16.msra.mxu1 %v1465_v59 }
 0x621   : > { %2614 = vmatprep.subr.bf16.mxu1 %v2823_v2 }
 0x624   : > { %2615 = vmatpush3.bf16.msra.mxu1 %v1467_v60 }
 0x625   : > { %2616 = vmatprep.subr.bf16.mxu1 %v2823_v2 }
 0x628   : > { %2617 = vmatpush3.bf16.msra.mxu1 %v1469_v63 }
 0x629   : > { %2618 = vmatprep.subr.bf16.mxu1 %v2823_v2 }
 0x62c   : > { %2619 = vmatpush3.bf16.msra.mxu1 %v1471_v37 }
 0x62d   : > { %2620 = vmatprep.subr.bf16.mxu1 %v2823_v2 }
 0x630   : > { %2621 = vmatpush3.bf16.msra.mxu1 %v1473_v0 }
 0x631   : > { %2632 = vmatprep.subr.bf16.mxu1 %v2823_v2 }
 0x6e6   : > { %v1432_v1 = vpop.f32.mrb[24].mxu1 }
 0x6e7   : > { %v1439_v5 = vmul.f32 %v1432_v1, %v3025_v16  ;;  %v2604_v6 = vpop.f32.mrb[25].mxu1  ;;  %v1618_v16 = vsel %vm1067_vm5, %v1598_v21, 0 }
 0x6e8   : > { %v1435_v7 = vpop.f32.mrb[26].mxu1  ;;  %v2324_v6 = vld [vmem:[%s3384_s9] ss:$0 sm:$0xff] }
 0x6e9   : > { %v1440_v8 = vmul.f32 %v1435_v7, %v3027_v18  ;;  %1441 = vadd.xlane.f32.xlu1 %v1439_v5  ;;  %v2605_v9 = vpop.f32.mrb[27].mxu1  ;;  %v1600_v18 = vpop.permute.xlu1 %1599 }
 0x6ea   : > { %v1621_v22 = vsel %vm1067_vm5, %v1600_v18, 0 }
 0x6eb   : > { %v1449_v17 = vpack.c.bf16 %v1440_v8, %v1439_v5  ;;  %1443 = vadd.xlane.f32.xlu0 %v1440_v8 }
 0x6ed   : > { %2623 = vmatmul.mubr.bf16.vlgmr.msra.gmra.mrb[28].mxu1 %v1449_v17  ;;  %v1602_v23 = vpop.permute.xlu1 %1601 }
 0x6ee   : > { %2633 = vmatpush3.bf16.xpose.msra.mxu1 %v1615_v20  ;;  %2648 = vmatprep.mubr.msk.bf16.mxu1 %vm2824_vm1, %v2823_v2  ;;  %v1624_v24 = vsel %vm1067_vm5, %v1602_v23, 0 }
 0x6ef   : > { %2634 = vmatprep.subr.bf16.mxu1 %v2823_v2 }
 0x6f6   : > { %2635 = vmatpush3.bf16.xpose.msra.mxu1 %v1618_v16 }
 0x6f7   : > { %2636 = vmatprep.subr.bf16.mxu1 %v2823_v2 }
 0x6fa   : > { %1862 = vrot.lane.b32.xlu1 %v2978_v31, %s2828_s25  ;;  %v1604_v31 = vpop.permute.xlu1 %1603 }
 0x6fe   : > { %2637 = vmatpush3.bf16.xpose.msra.mxu1 %v1621_v22  ;;  %1866 = vrot.lane.b32.xlu1 %v2985_v45, %s2828_s25  ;;  %v1627_v45 = vsel %vm1067_vm5, %v1604_v31, 0 }
 0x6ff   : > { %2638 = vmatprep.subr.bf16.mxu1 %v2823_v2 }
 0x702   : > { %1868 = vrot.lane.b32.xlu1 %v2983_v44, %s2828_s25  ;;  %v1606_v44 = vpop.permute.xlu1 %1605 }
 0x706   : > { %2639 = vmatpush3.bf16.xpose.msra.mxu1 %v1624_v24  ;;  %1872 = vrot.lane.b32.xlu1 %v2990_v55, %s2828_s25  ;;  %v1630_v55 = vsel %vm1067_vm5, %v1606_v44, 0  ;;  %v1610_v28 = vpop.permute.xlu1 %1609 }
 0x707   : > { %2640 = vmatprep.subr.bf16.mxu1 %v2823_v2  ;;  %v1636_v30 = vsel %vm1067_vm5, %v1610_v28, 0 }
 0x70a   : > { %1876 = vrot.lane.b32.xlu1 %v2997_v3, %s2828_s25  ;;  %v1608_v3 = vpop.permute.xlu0 %1607 }
 0x70b   : > { %v1633_v25 = vsel %vm1067_vm5, %v1608_v3, 0 }
 0x70e   : > { %2641 = vmatpush3.bf16.xpose.msra.mxu1 %v1627_v45  ;;  %1740 = vrot.lane.b32.xlu1 %v3071_v50, %s2827_s22  ;;  %v1594_v32 = vpop.permute.xlu0 %1593 }
 0x70f   : > { %2642 = vmatprep.subr.bf16.mxu1 %v2823_v2 }
 0x712   : > { %1744 = vrot.lane.b32.xlu1 %v3075_v62, %s2827_s22 }
 0x716   : > { %2643 = vmatpush3.bf16.xpose.msra.mxu1 %v1630_v55  ;;  %1748 = vrot.lane.b32.xlu1 %v3079_v12, %s2827_s22 }
 0x717   : > { %2644 = vmatprep.subr.bf16.mxu1 %v2823_v2 }
 0x71a   : > { %1752 = vrot.lane.b32.xlu1 %v3083_v27, %s2827_s22 }
 0x71e   : > { %2645 = vmatpush3.bf16.xpose.msra.mxu1 %v1633_v25 }
 0x71f   : > { %2646 = vmatprep.subr.bf16.mxu1 %v2823_v2 }
 0x726   : > { %2647 = vmatpush3.bf16.xpose.msra.mxu1 %v1636_v30 }
 0x727   : > { %2684 = vmatprep.subr.bf16.mxu1 %v2823_v2 }
 0x72d   : > { %2649 = vmatmul.mubr.msk.bf16.vlgmr.msra.gmra.mrb[32].mxu1 %vm1067_vm5, %v1594_v32 }
 0x72e   : > { %2700 = vmatprep.mubr.msk.bf16.mxu1 %vm2824_vm1, %v2823_v2 }
 0x776   : > { %v1442_v34 = vpop.xlane.xlu1 %1441 }
 0x777   : > { %v1445_v40 = vmax.f32 %v1442_v34, 1e-30 }
 0x778   : > { %v1444_v39 = vpop.xlane.xlu0 %1443 }
 0x779   : > { %v1446_v41 = vmax.f32 %v1444_v39, 1e-30  ;;  %2798 = vrcp.f32 %v1445_v40 }
 0x77a   : > { %v1863_v35 = vpop.permute.xlu1 %1862 }
 0x77b   : > { %v1882_v36 = vsel %vm1067_vm5, %v1863_v35, 0  ;;  %2800 = vrcp.f32 %v1446_v41 }
 0x77c   : > { %2685 = vmatpush3.bf16.xpose.msra.mxu1 %v1882_v36 }
 0x77d   : > { %2686 = vmatprep.subr.bf16.mxu1 %v2823_v2 }
 0x783   : > { %v2799_v43 = vpop.eup %2798 }
 0x785   : > { %v2801_v47 = vpop.eup %2800 }
 0x7c0   : > { %v1516_v42 = vpop.f32.mrb[28].mxu1 }
 0x7c1   : > { %v2624_v46 = vpop.f32.mrb[29].mxu1  ;;  %v1523_v51 = vmul.f32 %v2799_v43, %v1516_v42 }
 0x7c2   : > { %v1519_v48 = vpop.f32.mrb[30].mxu1 }
 0x7c3   : > { %v1524_v52 = vmul.f32 %v2801_v47, %v1519_v48  ;;  %v2625_v53 = vpop.f32.mrb[31].mxu1 }
 0x7c5   : > { %v1525_v54 = vpack.c.bf16 %v1524_v52, %v1523_v51 }
 0x7c7   : > { %2629 = vmatmul.mubr.msk.bf16.vlgmr.msra.gmra.mrb[32].mxu0 %vm1067_vm5, %v1525_v54 }
 0x7c8   : > { %2654 = vmatprep.mubr.msk.bf16.mxu0 %vm2824_vm1, %v2823_v2 }
 0x800   : > { %v1672_v57 = vpop.f32.mrb[32].mxu1 }
 0x801   : > { %v2650_v58 = vpop.f32.mrb[33].mxu1  ;;  %v1678_v59 = vsel %vm1135_vm6, %v1672_v57, -inf }
 0x802   : > { %1679 = vmax.xlane.f32.xlu0 %v1678_v59  ;;  %v1675_v60 = vpop.f32.mrb[34].mxu1 }
 0x803   : > { %v2651_v63 = vpop.f32.mrb[35].mxu1 }
 0x818   : > { %1864 = vrot.lane.b32.xlu0 %v2976_v29, %s2828_s25  ;;  %v1867_v29 = vpop.permute.xlu1 %1866 }
 0x819   : > { %v1888_v17 = vsel %vm1067_vm5, %v1867_v29, 0 }
 0x81c   : > { %1870 = vrot.lane.b32.xlu0 %v2992_v56, %s2828_s25  ;;  %v1869_v1 = vpop.permute.xlu1 %1868 }
 0x81d   : > { %v1891_v45 = vsel %vm1067_vm5, %v1869_v1, 0 }
 0x820   : > { %1874 = vrot.lane.b32.xlu0 %v2999_v4, %s2828_s25  ;;  %v1873_v7 = vpop.permute.xlu1 %1872 }
 0x821   : > { %v1897_v30 = vsel %vm1067_vm5, %v1873_v7, 0  ;;  %v2814_v7 = vld [vmem:[%s3379_s4] sm:$0xff]  }
 0x824   : > { %1860 = vrot.lane.b32.xlu0 %v3019_v14, %s2828_s25  ;;  %v1877_v24 = vpop.permute.xlu1 %1876 }
 0x825   : > { %v1903_v39 = vsel %vm1067_vm5, %v1877_v24, 0 }
 0x828   : > { %1742 = vrot.lane.b32.xlu0 %v3069_v49, %s2827_s22  ;;  %v1741_v55 = vpop.permute.xlu1 %1740 }
 0x82c   : > { %1746 = vrot.lane.b32.xlu0 %v3073_v61, %s2827_s22  ;;  %v1745_v28 = vpop.permute.xlu1 %1744 }
 0x830   : > { %1750 = vrot.lane.b32.xlu0 %v3077_v10, %s2827_s22  ;;  %v1749_v32 = vpop.permute.xlu1 %1748 }
 0x834   : > { %1754 = vrot.lane.b32.xlu0 %v3081_v26, %s2827_s22  ;;  %v1753_v35 = vpop.permute.xlu1 %1752 }
 0x88f   : > { %v1680_v56 = vpop.xlane.xlu0 %1679 }
 0x890   : > { %v1681_v4 = vsub.f32 %v1672_v57, %v1680_v56 }
 0x892   : > { %v1682_v37 = vmul.f32 1.442695, %v1681_v4 }
 0x893   : > { %v1865_v0 = vpop.permute.xlu0 %1864 }
 0x894   : > { %2802 = vpow2.f32 %v1682_v37  ;;  %v1885_v14 = vsel %vm1067_vm5, %v1865_v0, 0 }
 0x895   : > { %2687 = vmatpush3.bf16.xpose.msra.mxu1 %v1885_v14 }
 0x896   : > { %2688 = vmatprep.subr.bf16.mxu1 %v2823_v2 }
 0x897   : > { %v1871_v5 = vpop.permute.xlu0 %1870 }
 0x898   : > { %v1894_v25 = vsel %vm1067_vm5, %v1871_v5, 0 }
 0x89a   : > { %v1569_v8 = vpop.f32.mrb[32].mxu0 }
 0x89b   : > { %v2736_v9 = vadd.f32 %v2324_v6, %v1569_v8  ;;  %v2630_v13 = vpop.f32.mrb[33].mxu0  ;;  %v1875_v22 = vpop.permute.xlu0 %1874 }
 0x89c   : > { %v1572_v20 = vpop.f32.mrb[34].mxu0  ;;  %v1900_v34 = vsel %vm1067_vm5, %v1875_v22, 0 }
 0x89d   : > { %1578 = vst [vmem:[%s448_s14] sm:$0xff] %v2736_v9  ;;  %v2737_v21 = vadd.f32 %v2324_v6, %v1572_v20  ;;  %2689 = vmatpush3.bf16.xpose.msra.mxu1 %v1888_v17  ;;  %v2631_v16 = vpop.f32.mrb[35].mxu0 }
 0x89e   : > { %v2803_v18 = vpop.eup %2802  ;;  %2690 = vmatprep.subr.bf16.mxu1 %v2823_v2 }
 0x89f   : > { %v1684_v23 = vpack.c.bf16 %v2803_v18, %v2803_v18  ;;  %1579 = vst [vmem:[%s448_s14 + $0x8] sm:$0xff] %v2737_v21  ;;  %v1861_v44 = vpop.permute.xlu0 %1860 }
 0x8a1   : > { %v1686_v31 = vand.u32 %v1684_v23, %v2938_v11 }
 0x8a3   : > { %2653 = vmatpush3.bf16.msra.mxu0 %v1686_v31  ;;  %v1743_v3 = vpop.permute.xlu0 %1742 }
 0x8a4   : > { %2658 = vmatprep.subr.bf16.mxu0 %v2823_v2 }
 0x8a5   : > { %2691 = vmatpush3.bf16.xpose.msra.mxu1 %v1891_v45 }
 0x8a6   : > { %2655 = vmatmul.mubr.msk.bf16.vlgmr.msra.gmra.mrb[40].mxu0 %vm938_vm4, %v2967_v19  ;;  %2692 = vmatprep.subr.bf16.mxu1 %v2823_v2 }
 0x8a7   : > { %2659 = vmatpush3.bf16.msra.mxu0 %v1741_v55  ;;  %2674 = vmatprep.mubr.msk.bf16.mxu0 %vm2824_vm1, %v2823_v2  ;;  %v1747_v19 = vpop.permute.xlu0 %1746 }
 0x8a8   : > { %2660 = vmatprep.subr.bf16.mxu0 %v2823_v2 }
 0x8ab   : > { %2661 = vmatpush3.bf16.msra.mxu0 %v1743_v3  ;;  %v1751_v33 = vpop.permute.xlu0 %1750 }
 0x8ac   : > { %2662 = vmatprep.subr.bf16.mxu0 %v2823_v2 }
 0x8ad   : > { %2693 = vmatpush3.bf16.xpose.msra.mxu1 %v1894_v25 }
 0x8ae   : > { %2694 = vmatprep.subr.bf16.mxu1 %v2823_v2 }
 0x8af   : > { %2663 = vmatpush3.bf16.msra.mxu0 %v1745_v28  ;;  %v1755_v36 = vpop.permute.xlu0 %1754 }
 0x8b0   : > { %2664 = vmatprep.subr.bf16.mxu0 %v2823_v2 }
 0x8b3   : > { %2665 = vmatpush3.bf16.msra.mxu0 %v1747_v19 }
 0x8b4   : > { %2666 = vmatprep.subr.bf16.mxu0 %v2823_v2 }
 0x8b5   : > { %2695 = vmatpush3.bf16.xpose.msra.mxu1 %v1897_v30 }
 0x8b6   : > { %2696 = vmatprep.subr.bf16.mxu1 %v2823_v2 }
 0x8b7   : > { %2667 = vmatpush3.bf16.msra.mxu0 %v1749_v32 }
 0x8b8   : > { %2668 = vmatprep.subr.bf16.mxu0 %v2823_v2 }
 0x8bb   : > { %2669 = vmatpush3.bf16.msra.mxu0 %v1751_v33 }
 0x8bc   : > { %2670 = vmatprep.subr.bf16.mxu0 %v2823_v2 }
 0x8bd   : > { %2697 = vmatpush3.bf16.xpose.msra.mxu1 %v1900_v34 }
 0x8be   : > { %2698 = vmatprep.subr.bf16.mxu1 %v2823_v2 }
 0x8bf   : > { %2671 = vmatpush3.bf16.msra.mxu0 %v1753_v35 }
 0x8c0   : > { %2672 = vmatprep.subr.bf16.mxu0 %v2823_v2 }
 0x8c3   : > { %2673 = vmatpush3.bf16.msra.mxu0 %v1755_v36  ;;  %v2338_v36 = vld [vmem:[%s3384_s9 + $0x1] ss:$0 sm:$0xff] }
 0x8c4   : > { %2678 = vmatprep.subr.bf16.mxu0 %v2823_v2 }
 0x8c5   : > { %2699 = vmatpush3.bf16.xpose.msra.mxu1 %v1903_v39 }
 0x8cc   : > { %2701 = vmatmul.mubr.msk.bf16.vlgmr.msra.gmra.mrb[36].mxu1 %vm1067_vm5, %v1861_v44  ;;  %v2789_v44 = vld [vmem:[%s3383_s8 + $0x18] sm:$0xff]  }
 0x979   : > { %v1722_v40 = vpop.f32.mrb[40].mxu0 }
 0x97a   : > { %v1729_v41 = vmul.f32 %v1722_v40, %v3107_v15  ;;  %v2656_v42 = vpop.f32.mrb[41].mxu0 }
 0x97b   : > { %v1725_v43 = vpop.f32.mrb[42].mxu0 }
 0x97c   : > { %v1730_v46 = vmul.f32 %v1725_v43, %v3109_v38  ;;  %1731 = vadd.xlane.f32.xlu1 %v1729_v41  ;;  %v2657_v47 = vpop.f32.mrb[43].mxu0 }
 0x97e   : > { %v1739_v48 = vpack.c.bf16 %v1730_v46, %v1729_v41  ;;  %1733 = vadd.xlane.f32.xlu0 %v1730_v46 }
 0x980   : > { %2675 = vmatmul.mubr.bf16.vlgmr.msra.gmra.mrb[44].mxu0 %v1739_v48 }
 0x981   : > { %2680 = vmatprep.mubr.msk.bf16.mxu0 %vm2824_vm1, %v2823_v2 }
 0x98d   : > { %2007 = vrot.lane.b32.xlu1 %v3071_v50, %s2828_s25  ;;  %v2788_v50 = vld [vmem:[%s3383_s8 + $0x10] sm:$0xff]  }
 0x98e   : > { %2679 = vmatpush3.bf16.msra.mxu0 %v2788_v50 }
 0x98f   : > { %2704 = vmatprep.subr.bf16.mxu0 %v2823_v2 }
 0x991   : > { %2011 = vrot.lane.b32.xlu1 %v3075_v62, %s2828_s25 }
 0x995   : > { %2013 = vrot.lane.b32.xlu1 %v3073_v61, %s2828_s25 }
 0x999   : > { %2017 = vrot.lane.b32.xlu1 %v3077_v10, %s2828_s25 }
 0x99d   : > { %2021 = vrot.lane.b32.xlu1 %v3081_v26, %s2828_s25 }
 0x99f   : > { %v1939_v51 = vpop.f32.mrb[36].mxu1 }
 0x9a0   : > { %v2702_v52 = vpop.f32.mrb[37].mxu1  ;;  %v1945_v53 = vsel %vm1135_vm6, %v1939_v51, -inf }
 0x9a1   : > { %v1942_v54 = vpop.f32.mrb[38].mxu1  ;;  %1946 = vmax.xlane.f32.xlu0 %v1945_v53 }
 0x9a2   : > { %v2703_v57 = vpop.f32.mrb[39].mxu1 }
 0x9b7   : > { %2009 = vrot.lane.b32.xlu0 %v3069_v49, %s2828_s25 }
 0x9bb   : > { %2015 = vrot.lane.b32.xlu0 %v3079_v12, %s2828_s25 }
 0x9bf   : > { %2019 = vrot.lane.b32.xlu0 %v3083_v27, %s2828_s25 }
 0xa09   : > { %v1732_v26 = vpop.xlane.xlu1 %1731 }
 0xa0a   : > { %v1735_v59 = vmax.f32 %v1732_v26, 1e-30 }
 0xa0b   : > { %v1734_v61 = vpop.xlane.xlu0 %1733 }
 0xa0c   : > { %v1736_v49 = vmax.f32 %v1734_v61, 1e-30 }
 0xa0d   : > { %v2008_v6 = vpop.permute.xlu1 %2007 }
 0xa11   : > { %v2012_v8 = vpop.permute.xlu1 %2011 }
 0xa15   : > { %v2014_v9 = vpop.permute.xlu1 %2013 }
 0xa19   : > { %v2018_v17 = vpop.permute.xlu1 %2017 }
 0xa1d   : > { %v2022_v21 = vpop.permute.xlu1 %2021 }
 0xa2e   : > { %v1947_v62 = vpop.xlane.xlu0 %1946 }
 0xa2f   : > { %v1948_v10 = vsub.f32 %v1939_v51, %v1947_v62 }
 0xa31   : > { %v1949_v58 = vmul.f32 1.442695, %v1948_v10 }
 0xa33   : > { %2804 = vpow2.f32 %v1949_v58 }
 0xa34   : > { %2806 = vrcp.f32 %v1735_v59 }
 0xa35   : > { %2808 = vrcp.f32 %v1736_v49 }
 0xa3d   : > { %v2805_v12 = vpop.eup %2804 }
 0xa3e   : > { %v2807_v27 = vpop.eup %2806  ;;  %v1951_v56 = vpack.c.bf16 %v2805_v12, %v2805_v12 }
 0xa3f   : > { %v2809_v29 = vpop.eup %2808 }
 0xa40   : > { %v1953_v5 = vand.u32 %v1951_v56, %v2938_v11  ;;  %v2010_v11 = vpop.permute.xlu0 %2009 }
 0xa44   : > { %v2016_v13 = vpop.permute.xlu0 %2015 }
 0xa48   : > { %v2020_v20 = vpop.permute.xlu0 %2019 }
 0xa53   : > { %v1798_v60 = vpop.f32.mrb[44].mxu0 }
 0xa54   : > { %v2676_v63 = vpop.f32.mrb[45].mxu0  ;;  %v1805_v37 = vmul.f32 %v2807_v27, %v1798_v60 }
 0xa55   : > { %v1801_v4 = vpop.f32.mrb[46].mxu0 }
 0xa56   : > { %v1806_v0 = vmul.f32 %v2809_v29, %v1801_v4  ;;  %v2677_v1 = vpop.f32.mrb[47].mxu0 }
 0xa58   : > { %v1807_v14 = vpack.c.bf16 %v1806_v0, %v1805_v37 }
 0xa5a   : > { %2681 = vmatmul.mubr.msk.bf16.vlgmr.msra.gmra.mrb[48].mxu0 %vm1067_vm5, %v1807_v14 }
 0xa5b   : > { %2705 = vmatpush3.bf16.msra.mxu0 %v1953_v5  ;;  %2706 = vmatprep.mubr.msk.bf16.mxu0 %vm2824_vm1, %v2823_v2 }
 0xa5c   : > { %2710 = vmatprep.subr.bf16.mxu0 %v2823_v2 }
 0xa62   : > { %2707 = vmatmul.mubr.msk.bf16.vlgmr.msra.gmra.mrb[52].mxu0 %vm938_vm4, %v2814_v7 }
 0xa63   : > { %2711 = vmatpush3.bf16.msra.mxu0 %v2008_v6  ;;  %2726 = vmatprep.mubr.msk.bf16.mxu0 %vm2824_vm1, %v2823_v2 }
 0xa64   : > { %2712 = vmatprep.subr.bf16.mxu0 %v2823_v2 }
 0xa67   : > { %2713 = vmatpush3.bf16.msra.mxu0 %v2010_v11 }
 0xa68   : > { %2714 = vmatprep.subr.bf16.mxu0 %v2823_v2 }
 0xa6b   : > { %2715 = vmatpush3.bf16.msra.mxu0 %v2012_v8 }
 0xa6c   : > { %2716 = vmatprep.subr.bf16.mxu0 %v2823_v2 }
 0xa6f   : > { %2717 = vmatpush3.bf16.msra.mxu0 %v2014_v9 }
 0xa70   : > { %2718 = vmatprep.subr.bf16.mxu0 %v2823_v2 }
 0xa73   : > { %2719 = vmatpush3.bf16.msra.mxu0 %v2016_v13 }
 0xa74   : > { %2720 = vmatprep.subr.bf16.mxu0 %v2823_v2 }
 0xa77   : > { %2721 = vmatpush3.bf16.msra.mxu0 %v2018_v17 }
 0xa78   : > { %2722 = vmatprep.subr.bf16.mxu0 %v2823_v2 }
 0xa7b   : > { %2723 = vmatpush3.bf16.msra.mxu0 %v2020_v20 }
 0xa7c   : > { %2724 = vmatprep.subr.bf16.mxu0 %v2823_v2 }
 0xa7f   : > { %2725 = vmatpush3.bf16.msra.mxu0 %v2022_v21 }
 0xa80   : > { %2730 = vmatprep.subr.bf16.mxu0 %v2823_v2 }
 0xb35   : > { %v1989_v16 = vpop.f32.mrb[52].mxu0 }
 0xb36   : > { %v1996_v18 = vmul.f32 %v1989_v16, %v3107_v15  ;;  %v2708_v22 = vpop.f32.mrb[53].mxu0 }
 0xb37   : > { %v1992_v23 = vpop.f32.mrb[54].mxu0 }
 0xb38   : > { %v1997_v24 = vmul.f32 %v1992_v23, %v3109_v38  ;;  %1998 = vadd.xlane.f32.xlu0 %v1996_v18  ;;  %v2709_v31 = vpop.f32.mrb[55].mxu0 }
 0xb3a   : > { %v2006_v45 = vpack.c.bf16 %v1997_v24, %v1996_v18  ;;  %2000 = vadd.xlane.f32.xlu1 %v1997_v24 }
 0xb3c   : > { %2727 = vmatmul.mubr.bf16.vlgmr.msra.gmra.mrb[56].mxu0 %v2006_v45 }
 0xb3d   : > { %2732 = vmatprep.mubr.msk.bf16.mxu0 %vm2824_vm1, %v2823_v2  ;;  %2731 = vmatpush3.bf16.msra.mxu0 %v2789_v44 }
 0xbc5   : > { %v1999_v55 = vpop.xlane.xlu0 %1998 }
 0xbc6   : > { %v2002_v15 = vmax.f32 %v1999_v55, 1e-30 }
 0xbc7   : > { %v2001_v3 = vpop.xlane.xlu1 %2000 }
 0xbc8   : > { %v2003_v25 = vmax.f32 %v2001_v3, 1e-30  ;;  %2810 = vrcp.f32 %v2002_v15 }
 0xbca   : > { %2812 = vrcp.f32 %v2003_v25 }
 0xbd2   : > { %v2811_v28 = vpop.eup %2810 }
 0xbd4   : > { %v2813_v30 = vpop.eup %2812 }
 0xc0f   : > { %v2065_v38 = vpop.f32.mrb[56].mxu0 }
 0xc10   : > { %v2728_v19 = vpop.f32.mrb[57].mxu0  ;;  %v2072_v33 = vmul.f32 %v2811_v28, %v2065_v38 }
 0xc11   : > { %v2068_v32 = vpop.f32.mrb[58].mxu0 }
 0xc12   : > { %v2073_v34 = vmul.f32 %v2813_v30, %v2068_v32  ;;  %v2729_v2 = vpop.f32.mrb[59].mxu0 }
 0xc14   : > { %v2074_v35 = vpack.c.bf16 %v2073_v34, %v2072_v33 }
 0xc16   : > { %2733 = vmatmul.mubr.msk.bf16.vlgmr.msra.gmra.mrb[48].mxu0 %vm1067_vm5, %v2074_v35 }
 0xce9   : > { %v2118_v39 = vpop.f32.mrb[48].mxu0 }
 0xcea   : > { %v2738_v40 = vadd.f32 %v2338_v36, %v2118_v39  ;;  %v2734_v41 = vpop.f32.mrb[49].mxu0 }
 0xceb   : > { %v2121_v42 = vpop.f32.mrb[50].mxu0 }
 0xcec   : > { %2127 = vst [vmem:[%s453_s27] sm:$0xff] %v2738_v40  ;;  %v2739_v43 = vadd.f32 %v2338_v36, %v2121_v42  ;;  %v2735_v46 = vpop.f32.mrb[51].mxu0 }
 0xcee   : > { %2128 = vst [vmem:[%s453_s27 + $0x8] sm:$0xff] %v2739_v43 }
 0xcef PF: > { %s22_s17 = sadd.s32 1, %s2821_s17  }
 0xcf0   : > { %p19_p4 = scmp.ge.s32.totalorder %s22_s17, 4  }
 0xcf2   :  { %21 = sbr.rel (!%p19_p4) target bundleno = 1 (0x1), region = 117 }

</bundles_post_ra>
